<compile_context>
chip_gen: v7x
topology: tpu7x:2x2x1
jax: 0.10.0
libtpu: 0.0.40
codegen_flags: <defaults>
</compile_context>

<pallas_src>
import jax
import jax.numpy as jnp
from jax.experimental import pallas as pl
from jax.experimental.pallas import tpu as pltpu


_PACK = 16                  # samples packed per 128-lane row (16 * 8 features = 128)
_N_IN, _H1, _H2, _N_OUT = 8, 6, 4, 1

# Flat SMEM parameter layout (f32 scalars):
_W1_OFF = 0                          # w1[k, j] at _W1_OFF + k*_H1 + j   (8*6)
_B1_OFF = _W1_OFF + _N_IN * _H1      # b1[j]                              (6)
_W2_OFF = _B1_OFF + _H1              # w2[k, j] at _W2_OFF + k*_H2 + j   (6*4)
_B2_OFF = _W2_OFF + _H1 * _H2        # b2[j]                              (4)
_W3_OFF = _B2_OFF + _H2              # w3[k]   at _W3_OFF + k             (4)
_B3_OFF = _W3_OFF + _H2 * _N_OUT     # b3                                 (1)
_N_PARAMS = 128                      # padded 1-D SMEM array length


def _sigmoid(z):
    # One EUP transcendental (tanh) + mul/add instead of exp + add + reciprocal.
    return 0.5 * jnp.tanh(0.5 * z) + 0.5


def _mlp_kernel(params_ref, x_ref, o_ref, xt_ref):
    """One batch tile.

    params_ref : (128,)    f32 SMEM  -- packed weights + biases (scalar reads)
    x_ref      : (rt, 128) f32 VMEM  -- 16*rt samples, lane-packed, sample-major
    o_ref      : (rt, 16)  f32 VMEM  -- per-sample outputs, same row packing
    xt_ref     : (128, rt) f32 VMEM  -- scratch for the feature-major relayout
    """
    # Feature-major relayout: a fully (8,128)-aligned block transpose (XLU),
    # then sublane-strided reads de-interleave the 8 features into (16, rt)
    # slabs: xs[k][p, r] = feature k of sample 16*r + p.
    xt_ref[...] = x_ref[...].T
    xs = [xt_ref[pl.ds(k, _PACK, stride=_N_IN), :] for k in range(_N_IN)]

    def dense_sigmoid(slabs, w_off, b_off, n_in, n_out):
        # Pure VPU: scalar weights from SMEM * full-vreg (16, rt) slabs.
        outs = []
        for j in range(n_out):
            acc = slabs[0] * params_ref[w_off + j]
            for k in range(1, n_in):
                acc = acc + slabs[k] * params_ref[w_off + k * n_out + j]
            outs.append(_sigmoid(acc + params_ref[b_off + j]))
        return outs

    h1 = dense_sigmoid(xs, _W1_OFF, _B1_OFF, _N_IN, _H1)        # 6 x (16, rt)
    h2 = dense_sigmoid(h1, _W2_OFF, _B2_OFF, _H1, _H2)          # 4 x (16, rt)
    y = dense_sigmoid(h2, _W3_OFF, _B3_OFF, _H2, _N_OUT)[0]     # (16, rt)

    # Back to sample-major rows so the output block matches the HBM layout.
    o_ref[...] = y.T                                            # (rt, 16)


def _round_up(a, m):
    return ((a + m - 1) // m) * m


def _pack_params(w1, b1, w2, b2, w3, b3):
    flat = jnp.concatenate([
        jnp.asarray(w1, jnp.float32).reshape(-1),   # (8, 6) -> 48
        jnp.asarray(b1, jnp.float32).reshape(-1),   # 6
        jnp.asarray(w2, jnp.float32).reshape(-1),   # (6, 4) -> 24
        jnp.asarray(b2, jnp.float32).reshape(-1),   # 4
        jnp.asarray(w3, jnp.float32).reshape(-1),   # (4, 1) -> 4
        jnp.asarray(b3, jnp.float32).reshape(-1),   # 1
    ])
    return jnp.pad(flat, (0, _N_PARAMS - flat.shape[0]))


def mlp_reference(x, w1, b1, w2, b2, w3, b3):
    """Plain-XLA forward pass (also the small-batch fast path)."""
    hp = jax.lax.Precision.HIGHEST
    x = x.astype(jnp.float32)
    h1 = jax.nn.sigmoid(jnp.dot(x, w1, precision=hp) + b1)
    h2 = jax.nn.sigmoid(jnp.dot(h1, w2, precision=hp) + b2)
    return jax.nn.sigmoid(jnp.dot(h2, w3, precision=hp) + b3)


def logistic_mlp(x, w1, b1, w2, b2, w3, b3, *, tb_max=8192, min_pallas_batch=2048):
    """x: (B, 8) f32 -> (B, 1), equal to sigmoid(L3(sigmoid(L2(sigmoid(L1(x))))))."""
    B = x.shape[0]

    # Tiny batches: the fused XLA MLP beats any kernel-launch + layout path.
    if B < min_pallas_batch:
        return mlp_reference(x, w1, b1, w2, b2, w3, b3)

    x = x.astype(jnp.float32)
    pad = (-B) % _PACK
    if pad:  # rare: only pays a copy when B is not a multiple of 16
        x = jnp.pad(x, ((0, pad), (0, 0)))
    bp = B + pad
    rows = bp // _PACK                        # packed rows, 16 samples each
    xp = x.reshape(rows, _PACK * _N_IN)       # free reshape: (rows, 128), lane-dense

    # Rows per grid step: multiple of 128 (keeps both in-kernel transposes on
    # whole (8,128) tiles), >= ~4 steps for large B (feeds both v7x TCs), and
    # capped at tb_max samples per step (well under VMEM on all generations).
    rt_cap = max(128, _round_up(tb_max, 128 * _PACK) // _PACK)
    rt = min(rt_cap, max(128, _round_up(pl.cdiv(rows, 4), 128)))
    grid = (pl.cdiv(rows, rt),)

    out = pl.pallas_call(
        _mlp_kernel,
        out_shape=jax.ShapeDtypeStruct((rows, _PACK), jnp.float32),
        grid=grid,
        in_specs=[
            pl.BlockSpec(memory_space=pltpu.MemorySpace.SMEM),    # packed params
            pl.BlockSpec((rt, _PACK * _N_IN), lambda i: (i, 0)),  # x row tiles
        ],
        out_specs=pl.BlockSpec((rt, _PACK), lambda i: (i, 0)),
        scratch_shapes=[pltpu.VMEM((_PACK * _N_IN, rt), jnp.float32)],
        compiler_params=pltpu.CompilerParams(
            # Batch tiles are independent -> shard across v7x's two TensorCores.
            dimension_semantics=("parallel",),
        ),
    )(_pack_params(w1, b1, w2, b2, w3, b3), xp)

    out = out.reshape(bp, 1)
    return out[:B] if pad else out


def init_params(key):
    # torch.nn.Linear-equivalent init, stored as (in, out) weights + (out,) biases.
    k1, k2, k3, k4, k5, k6 = jax.random.split(key, 6)

    def u(k, shape, fan_in):
        bound = 1.0 / jnp.sqrt(fan_in)
        return jax.random.uniform(k, shape, jnp.float32, -bound, bound)

    w1, b1 = u(k1, (8, 6), 8), u(k2, (6,), 8)
    w2, b2 = u(k3, (6, 4), 6), u(k4, (4,), 6)
    w3, b3 = u(k5, (4, 1), 4), u(k6, (1,), 4)
    return w1, b1, w2, b2, w3, b3


if __name__ == "__main__":
    key = jax.random.PRNGKey(0)
    kx1, kx2, kx3, kp = jax.random.split(key, 4)
    params = init_params(kp)

    # 1) Tiny batch, matching the original module's typical usage; routed to
    #    the plain-XLA short-circuit.
    x_small = jax.random.normal(kx1, (8, 8), jnp.float32)
    out_small = jax.block_until_ready(logistic_mlp(x_small, *params))
    assert out_small.shape == (8, 1)
    assert jnp.allclose(out_small, mlp_reference(x_small, *params), atol=1e-5, rtol=1e-5)

    # 2) Pallas path: B=4096 -> 256 packed rows, 128-row tiles -> 2 grid steps.
    x_mid = jax.random.normal(kx2, (4096, 8), jnp.float32)
    out_mid = jax.block_until_ready(logistic_mlp(x_mid, *params))
    assert out_mid.shape == (4096, 1)
    assert jnp.allclose(out_mid, mlp_reference(x_mid, *params), atol=1e-5, rtol=1e-5)

    # 3) Ragged batch (B % 16 != 0): small pad-to-16 plus a partial last block.
    x_rag = jax.random.normal(kx3, (4100, 8), jnp.float32)
    out_rag = jax.block_until_ready(logistic_mlp(x_rag, *params))
    assert out_rag.shape == (4100, 1)
    assert jnp.allclose(out_rag, mlp_reference(x_rag, *params), atol=1e-5, rtol=1e-5)

    print("KERNEL_OK")
</pallas_src>

<mosaic_0001>
module attributes {stable_mosaic.version = 11 : i64} {
  func.func @_mlp_kernel(%arg0: i32, %arg1: memref<128xf32, #tpu.memory_space<smem>>, %arg2: memref<128x128xf32, #tpu.memory_space<vmem>>, %arg3: memref<128x16xf32, #tpu.memory_space<vmem>>, %arg4: memref<128x128xf32, #tpu.memory_space<vmem>>) attributes {dimension_semantics = [#tpu.dimension_semantics<parallel>], iteration_bounds = array<i64: 2>, scalar_prefetch = 0 : i64, scratch_operands = 1 : i64, tpu.core_type = #tpu.core_type<tc>, window_params = [{transform_indices = @transform_0, window_bounds = array<i64: 128>}, {transform_indices = @transform_1, window_bounds = array<i64: 128, 128>}, {transform_indices = @transform_2, window_bounds = array<i64: 128, 16>}]} {
    %c0 = arith.constant 0 : index
    %c0_0 = arith.constant 0 : index
    %0 = vector.load %arg2[%c0, %c0_0] : memref<128x128xf32, #tpu.memory_space<vmem>>, vector<128x128xf32>
    %1 = tpu.transpose %0, [1, 0] : vector<128x128xf32> -> vector<128x128xf32>
    %c0_1 = arith.constant 0 : index
    %c0_2 = arith.constant 0 : index
    %2 = vector.load %arg4[%c0_1, %c0_2] : memref<128x128xf32, #tpu.memory_space<vmem>>, vector<128x128xf32>
    tpu.vector_store %arg4[%c0_1, %c0_2], %1 {strides = array<i32>} : memref<128x128xf32, #tpu.memory_space<vmem>>, vector<128x128xf32>,
    %c0_3 = arith.constant 0 : index
    %c0_4 = arith.constant 0 : index
    %3 = tpu.strided_load %arg4[%c0_3, %c0_4] {strides = array<i32: 8, 1>} : memref<128x128xf32, #tpu.memory_space<vmem>>, vector<16x128xf32>
    %c1 = arith.constant 1 : index
    %c0_5 = arith.constant 0 : index
    %4 = tpu.strided_load %arg4[%c1, %c0_5] {strides = array<i32: 8, 1>} : memref<128x128xf32, #tpu.memory_space<vmem>>, vector<16x128xf32>
    %c2 = arith.constant 2 : index
    %c0_6 = arith.constant 0 : index
    %5 = tpu.strided_load %arg4[%c2, %c0_6] {strides = array<i32: 8, 1>} : memref<128x128xf32, #tpu.memory_space<vmem>>, vector<16x128xf32>
    %c3 = arith.constant 3 : index
    %c0_7 = arith.constant 0 : index
    %6 = tpu.strided_load %arg4[%c3, %c0_7] {strides = array<i32: 8, 1>} : memref<128x128xf32, #tpu.memory_space<vmem>>, vector<16x128xf32>
    %c4 = arith.constant 4 : index
    %c0_8 = arith.constant 0 : index
    %7 = tpu.strided_load %arg4[%c4, %c0_8] {strides = array<i32: 8, 1>} : memref<128x128xf32, #tpu.memory_space<vmem>>, vector<16x128xf32>
    %c5 = arith.constant 5 : index
    %c0_9 = arith.constant 0 : index
    %8 = tpu.strided_load %arg4[%c5, %c0_9] {strides = array<i32: 8, 1>} : memref<128x128xf32, #tpu.memory_space<vmem>>, vector<16x128xf32>
    %c6 = arith.constant 6 : index
    %c0_10 = arith.constant 0 : index
    %9 = tpu.strided_load %arg4[%c6, %c0_10] {strides = array<i32: 8, 1>} : memref<128x128xf32, #tpu.memory_space<vmem>>, vector<16x128xf32>
    %c7 = arith.constant 7 : index
    %c0_11 = arith.constant 0 : index
    %10 = tpu.strided_load %arg4[%c7, %c0_11] {strides = array<i32: 8, 1>} : memref<128x128xf32, #tpu.memory_space<vmem>>, vector<16x128xf32>
    %c0_12 = arith.constant 0 : index
    %11 = memref.load %arg1[%c0_12] : memref<128xf32, #tpu.memory_space<smem>>
    %12 = vector.broadcast %11 : f32 to vector<16x128xf32>
    %13 = arith.mulf %3, %12 : vector<16x128xf32>
    %c6_13 = arith.constant 6 : index
    %14 = memref.load %arg1[%c6_13] : memref<128xf32, #tpu.memory_space<smem>>
    %15 = vector.broadcast %14 : f32 to vector<16x128xf32>
    %16 = arith.mulf %4, %15 : vector<16x128xf32>
    %17 = arith.addf %13, %16 : vector<16x128xf32>
    %c12 = arith.constant 12 : index
    %18 = memref.load %arg1[%c12] : memref<128xf32, #tpu.memory_space<smem>>
    %19 = vector.broadcast %18 : f32 to vector<16x128xf32>
    %20 = arith.mulf %5, %19 : vector<16x128xf32>
    %21 = arith.addf %17, %20 : vector<16x128xf32>
    %c18 = arith.constant 18 : index
    %22 = memref.load %arg1[%c18] : memref<128xf32, #tpu.memory_space<smem>>
    %23 = vector.broadcast %22 : f32 to vector<16x128xf32>
    %24 = arith.mulf %6, %23 : vector<16x128xf32>
    %25 = arith.addf %21, %24 : vector<16x128xf32>
    %c24 = arith.constant 24 : index
    %26 = memref.load %arg1[%c24] : memref<128xf32, #tpu.memory_space<smem>>
    %27 = vector.broadcast %26 : f32 to vector<16x128xf32>
    %28 = arith.mulf %7, %27 : vector<16x128xf32>
    %29 = arith.addf %25, %28 : vector<16x128xf32>
    %c30 = arith.constant 30 : index
    %30 = memref.load %arg1[%c30] : memref<128xf32, #tpu.memory_space<smem>>
    %31 = vector.broadcast %30 : f32 to vector<16x128xf32>
    %32 = arith.mulf %8, %31 : vector<16x128xf32>
    %33 = arith.addf %29, %32 : vector<16x128xf32>
    %c36 = arith.constant 36 : index
    %34 = memref.load %arg1[%c36] : memref<128xf32, #tpu.memory_space<smem>>
    %35 = vector.broadcast %34 : f32 to vector<16x128xf32>
    %36 = arith.mulf %9, %35 : vector<16x128xf32>
    %37 = arith.addf %33, %36 : vector<16x128xf32>
    %c42 = arith.constant 42 : index
    %38 = memref.load %arg1[%c42] : memref<128xf32, #tpu.memory_space<smem>>
    %39 = vector.broadcast %38 : f32 to vector<16x128xf32>
    %40 = arith.mulf %10, %39 : vector<16x128xf32>
    %41 = arith.addf %37, %40 : vector<16x128xf32>
    %c48 = arith.constant 48 : index
    %42 = memref.load %arg1[%c48] : memref<128xf32, #tpu.memory_space<smem>>
    %43 = vector.broadcast %42 : f32 to vector<16x128xf32>
    %44 = arith.addf %41, %43 : vector<16x128xf32>
    %cst = arith.constant 5.000000e-01 : f32
    %45 = vector.broadcast %cst : f32 to vector<16x128xf32>
    %46 = arith.mulf %45, %44 : vector<16x128xf32>
    %47 = math.tanh %46 : vector<16x128xf32>
    %cst_14 = arith.constant 5.000000e-01 : f32
    %48 = vector.broadcast %cst_14 : f32 to vector<16x128xf32>
    %49 = arith.mulf %48, %47 : vector<16x128xf32>
    %cst_15 = arith.constant 5.000000e-01 : f32
    %50 = vector.broadcast %cst_15 : f32 to vector<16x128xf32>
    %51 = arith.addf %49, %50 : vector<16x128xf32>
    %c1_16 = arith.constant 1 : index
    %52 = memref.load %arg1[%c1_16] : memref<128xf32, #tpu.memory_space<smem>>
    %53 = vector.broadcast %52 : f32 to vector<16x128xf32>
    %54 = arith.mulf %3, %53 : vector<16x128xf32>
    %c7_17 = arith.constant 7 : index
    %55 = memref.load %arg1[%c7_17] : memref<128xf32, #tpu.memory_space<smem>>
    %56 = vector.broadcast %55 : f32 to vector<16x128xf32>
    %57 = arith.mulf %4, %56 : vector<16x128xf32>
    %58 = arith.addf %54, %57 : vector<16x128xf32>
    %c13 = arith.constant 13 : index
    %59 = memref.load %arg1[%c13] : memref<128xf32, #tpu.memory_space<smem>>
    %60 = vector.broadcast %59 : f32 to vector<16x128xf32>
    %61 = arith.mulf %5, %60 : vector<16x128xf32>
    %62 = arith.addf %58, %61 : vector<16x128xf32>
    %c19 = arith.constant 19 : index
    %63 = memref.load %arg1[%c19] : memref<128xf32, #tpu.memory_space<smem>>
    %64 = vector.broadcast %63 : f32 to vector<16x128xf32>
    %65 = arith.mulf %6, %64 : vector<16x128xf32>
    %66 = arith.addf %62, %65 : vector<16x128xf32>
    %c25 = arith.constant 25 : index
    %67 = memref.load %arg1[%c25] : memref<128xf32, #tpu.memory_space<smem>>
    %68 = vector.broadcast %67 : f32 to vector<16x128xf32>
    %69 = arith.mulf %7, %68 : vector<16x128xf32>
    %70 = arith.addf %66, %69 : vector<16x128xf32>
    %c31 = arith.constant 31 : index
    %71 = memref.load %arg1[%c31] : memref<128xf32, #tpu.memory_space<smem>>
    %72 = vector.broadcast %71 : f32 to vector<16x128xf32>
    %73 = arith.mulf %8, %72 : vector<16x128xf32>
    %74 = arith.addf %70, %73 : vector<16x128xf32>
    %c37 = arith.constant 37 : index
    %75 = memref.load %arg1[%c37] : memref<128xf32, #tpu.memory_space<smem>>
    %76 = vector.broadcast %75 : f32 to vector<16x128xf32>
    %77 = arith.mulf %9, %76 : vector<16x128xf32>
    %78 = arith.addf %74, %77 : vector<16x128xf32>
    %c43 = arith.constant 43 : index
    %79 = memref.load %arg1[%c43] : memref<128xf32, #tpu.memory_space<smem>>
    %80 = vector.broadcast %79 : f32 to vector<16x128xf32>
    %81 = arith.mulf %10, %80 : vector<16x128xf32>
    %82 = arith.addf %78, %81 : vector<16x128xf32>
    %c49 = arith.constant 49 : index
    %83 = memref.load %arg1[%c49] : memref<128xf32, #tpu.memory_space<smem>>
    %84 = vector.broadcast %83 : f32 to vector<16x128xf32>
    %85 = arith.addf %82, %84 : vector<16x128xf32>
    %cst_18 = arith.constant 5.000000e-01 : f32
    %86 = vector.broadcast %cst_18 : f32 to vector<16x128xf32>
    %87 = arith.mulf %86, %85 : vector<16x128xf32>
    %88 = math.tanh %87 : vector<16x128xf32>
    %cst_19 = arith.constant 5.000000e-01 : f32
    %89 = vector.broadcast %cst_19 : f32 to vector<16x128xf32>
    %90 = arith.mulf %89, %88 : vector<16x128xf32>
    %cst_20 = arith.constant 5.000000e-01 : f32
    %91 = vector.broadcast %cst_20 : f32 to vector<16x128xf32>
    %92 = arith.addf %90, %91 : vector<16x128xf32>
    %c2_21 = arith.constant 2 : index
    %93 = memref.load %arg1[%c2_21] : memref<128xf32, #tpu.memory_space<smem>>
    %94 = vector.broadcast %93 : f32 to vector<16x128xf32>
    %95 = arith.mulf %3, %94 : vector<16x128xf32>
    %c8 = arith.constant 8 : index
    %96 = memref.load %arg1[%c8] : memref<128xf32, #tpu.memory_space<smem>>
    %97 = vector.broadcast %96 : f32 to vector<16x128xf32>
    %98 = arith.mulf %4, %97 : vector<16x128xf32>
    %99 = arith.addf %95, %98 : vector<16x128xf32>
    %c14 = arith.constant 14 : index
    %100 = memref.load %arg1[%c14] : memref<128xf32, #tpu.memory_space<smem>>
    %101 = vector.broadcast %100 : f32 to vector<16x128xf32>
    %102 = arith.mulf %5, %101 : vector<16x128xf32>
    %103 = arith.addf %99, %102 : vector<16x128xf32>
    %c20 = arith.constant 20 : index
    %104 = memref.load %arg1[%c20] : memref<128xf32, #tpu.memory_space<smem>>
    %105 = vector.broadcast %104 : f32 to vector<16x128xf32>
    %106 = arith.mulf %6, %105 : vector<16x128xf32>
    %107 = arith.addf %103, %106 : vector<16x128xf32>
    %c26 = arith.constant 26 : index
    %108 = memref.load %arg1[%c26] : memref<128xf32, #tpu.memory_space<smem>>
    %109 = vector.broadcast %108 : f32 to vector<16x128xf32>
    %110 = arith.mulf %7, %109 : vector<16x128xf32>
    %111 = arith.addf %107, %110 : vector<16x128xf32>
    %c32 = arith.constant 32 : index
    %112 = memref.load %arg1[%c32] : memref<128xf32, #tpu.memory_space<smem>>
    %113 = vector.broadcast %112 : f32 to vector<16x128xf32>
    %114 = arith.mulf %8, %113 : vector<16x128xf32>
    %115 = arith.addf %111, %114 : vector<16x128xf32>
    %c38 = arith.constant 38 : index
    %116 = memref.load %arg1[%c38] : memref<128xf32, #tpu.memory_space<smem>>
    %117 = vector.broadcast %116 : f32 to vector<16x128xf32>
    %118 = arith.mulf %9, %117 : vector<16x128xf32>
    %119 = arith.addf %115, %118 : vector<16x128xf32>
    %c44 = arith.constant 44 : index
    %120 = memref.load %arg1[%c44] : memref<128xf32, #tpu.memory_space<smem>>
    %121 = vector.broadcast %120 : f32 to vector<16x128xf32>
    %122 = arith.mulf %10, %121 : vector<16x128xf32>
    %123 = arith.addf %119, %122 : vector<16x128xf32>
    %c50 = arith.constant 50 : index
    %124 = memref.load %arg1[%c50] : memref<128xf32, #tpu.memory_space<smem>>
    %125 = vector.broadcast %124 : f32 to vector<16x128xf32>
    %126 = arith.addf %123, %125 : vector<16x128xf32>
    %cst_22 = arith.constant 5.000000e-01 : f32
    %127 = vector.broadcast %cst_22 : f32 to vector<16x128xf32>
    %128 = arith.mulf %127, %126 : vector<16x128xf32>
    %129 = math.tanh %128 : vector<16x128xf32>
    %cst_23 = arith.constant 5.000000e-01 : f32
    %130 = vector.broadcast %cst_23 : f32 to vector<16x128xf32>
    %131 = arith.mulf %130, %129 : vector<16x128xf32>
    %cst_24 = arith.constant 5.000000e-01 : f32
    %132 = vector.broadcast %cst_24 : f32 to vector<16x128xf32>
    %133 = arith.addf %131, %132 : vector<16x128xf32>
    %c3_25 = arith.constant 3 : index
    %134 = memref.load %arg1[%c3_25] : memref<128xf32, #tpu.memory_space<smem>>
    %135 = vector.broadcast %134 : f32 to vector<16x128xf32>
    %136 = arith.mulf %3, %135 : vector<16x128xf32>
    %c9 = arith.constant 9 : index
    %137 = memref.load %arg1[%c9] : memref<128xf32, #tpu.memory_space<smem>>
    %138 = vector.broadcast %137 : f32 to vector<16x128xf32>
    %139 = arith.mulf %4, %138 : vector<16x128xf32>
    %140 = arith.addf %136, %139 : vector<16x128xf32>
    %c15 = arith.constant 15 : index
    %141 = memref.load %arg1[%c15] : memref<128xf32, #tpu.memory_space<smem>>
    %142 = vector.broadcast %141 : f32 to vector<16x128xf32>
    %143 = arith.mulf %5, %142 : vector<16x128xf32>
    %144 = arith.addf %140, %143 : vector<16x128xf32>
    %c21 = arith.constant 21 : index
    %145 = memref.load %arg1[%c21] : memref<128xf32, #tpu.memory_space<smem>>
    %146 = vector.broadcast %145 : f32 to vector<16x128xf32>
    %147 = arith.mulf %6, %146 : vector<16x128xf32>
    %148 = arith.addf %144, %147 : vector<16x128xf32>
    %c27 = arith.constant 27 : index
    %149 = memref.load %arg1[%c27] : memref<128xf32, #tpu.memory_space<smem>>
    %150 = vector.broadcast %149 : f32 to vector<16x128xf32>
    %151 = arith.mulf %7, %150 : vector<16x128xf32>
    %152 = arith.addf %148, %151 : vector<16x128xf32>
    %c33 = arith.constant 33 : index
    %153 = memref.load %arg1[%c33] : memref<128xf32, #tpu.memory_space<smem>>
    %154 = vector.broadcast %153 : f32 to vector<16x128xf32>
    %155 = arith.mulf %8, %154 : vector<16x128xf32>
    %156 = arith.addf %152, %155 : vector<16x128xf32>
    %c39 = arith.constant 39 : index
    %157 = memref.load %arg1[%c39] : memref<128xf32, #tpu.memory_space<smem>>
    %158 = vector.broadcast %157 : f32 to vector<16x128xf32>
    %159 = arith.mulf %9, %158 : vector<16x128xf32>
    %160 = arith.addf %156, %159 : vector<16x128xf32>
    %c45 = arith.constant 45 : index
    %161 = memref.load %arg1[%c45] : memref<128xf32, #tpu.memory_space<smem>>
    %162 = vector.broadcast %161 : f32 to vector<16x128xf32>
    %163 = arith.mulf %10, %162 : vector<16x128xf32>
    %164 = arith.addf %160, %163 : vector<16x128xf32>
    %c51 = arith.constant 51 : index
    %165 = memref.load %arg1[%c51] : memref<128xf32, #tpu.memory_space<smem>>
    %166 = vector.broadcast %165 : f32 to vector<16x128xf32>
    %167 = arith.addf %164, %166 : vector<16x128xf32>
    %cst_26 = arith.constant 5.000000e-01 : f32
    %168 = vector.broadcast %cst_26 : f32 to vector<16x128xf32>
    %169 = arith.mulf %168, %167 : vector<16x128xf32>
    %170 = math.tanh %169 : vector<16x128xf32>
    %cst_27 = arith.constant 5.000000e-01 : f32
    %171 = vector.broadcast %cst_27 : f32 to vector<16x128xf32>
    %172 = arith.mulf %171, %170 : vector<16x128xf32>
    %cst_28 = arith.constant 5.000000e-01 : f32
    %173 = vector.broadcast %cst_28 : f32 to vector<16x128xf32>
    %174 = arith.addf %172, %173 : vector<16x128xf32>
    %c4_29 = arith.constant 4 : index
    %175 = memref.load %arg1[%c4_29] : memref<128xf32, #tpu.memory_space<smem>>
    %176 = vector.broadcast %175 : f32 to vector<16x128xf32>
    %177 = arith.mulf %3, %176 : vector<16x128xf32>
    %c10 = arith.constant 10 : index
    %178 = memref.load %arg1[%c10] : memref<128xf32, #tpu.memory_space<smem>>
    %179 = vector.broadcast %178 : f32 to vector<16x128xf32>
    %180 = arith.mulf %4, %179 : vector<16x128xf32>
    %181 = arith.addf %177, %180 : vector<16x128xf32>
    %c16 = arith.constant 16 : index
    %182 = memref.load %arg1[%c16] : memref<128xf32, #tpu.memory_space<smem>>
    %183 = vector.broadcast %182 : f32 to vector<16x128xf32>
    %184 = arith.mulf %5, %183 : vector<16x128xf32>
    %185 = arith.addf %181, %184 : vector<16x128xf32>
    %c22 = arith.constant 22 : index
    %186 = memref.load %arg1[%c22] : memref<128xf32, #tpu.memory_space<smem>>
    %187 = vector.broadcast %186 : f32 to vector<16x128xf32>
    %188 = arith.mulf %6, %187 : vector<16x128xf32>
    %189 = arith.addf %185, %188 : vector<16x128xf32>
    %c28 = arith.constant 28 : index
    %190 = memref.load %arg1[%c28] : memref<128xf32, #tpu.memory_space<smem>>
    %191 = vector.broadcast %190 : f32 to vector<16x128xf32>
    %192 = arith.mulf %7, %191 : vector<16x128xf32>
    %193 = arith.addf %189, %192 : vector<16x128xf32>
    %c34 = arith.constant 34 : index
    %194 = memref.load %arg1[%c34] : memref<128xf32, #tpu.memory_space<smem>>
    %195 = vector.broadcast %194 : f32 to vector<16x128xf32>
    %196 = arith.mulf %8, %195 : vector<16x128xf32>
    %197 = arith.addf %193, %196 : vector<16x128xf32>
    %c40 = arith.constant 40 : index
    %198 = memref.load %arg1[%c40] : memref<128xf32, #tpu.memory_space<smem>>
    %199 = vector.broadcast %198 : f32 to vector<16x128xf32>
    %200 = arith.mulf %9, %199 : vector<16x128xf32>
    %201 = arith.addf %197, %200 : vector<16x128xf32>
    %c46 = arith.constant 46 : index
    %202 = memref.load %arg1[%c46] : memref<128xf32, #tpu.memory_space<smem>>
    %203 = vector.broadcast %202 : f32 to vector<16x128xf32>
    %204 = arith.mulf %10, %203 : vector<16x128xf32>
    %205 = arith.addf %201, %204 : vector<16x128xf32>
    %c52 = arith.constant 52 : index
    %206 = memref.load %arg1[%c52] : memref<128xf32, #tpu.memory_space<smem>>
    %207 = vector.broadcast %206 : f32 to vector<16x128xf32>
    %208 = arith.addf %205, %207 : vector<16x128xf32>
    %cst_30 = arith.constant 5.000000e-01 : f32
    %209 = vector.broadcast %cst_30 : f32 to vector<16x128xf32>
    %210 = arith.mulf %209, %208 : vector<16x128xf32>
    %211 = math.tanh %210 : vector<16x128xf32>
    %cst_31 = arith.constant 5.000000e-01 : f32
    %212 = vector.broadcast %cst_31 : f32 to vector<16x128xf32>
    %213 = arith.mulf %212, %211 : vector<16x128xf32>
    %cst_32 = arith.constant 5.000000e-01 : f32
    %214 = vector.broadcast %cst_32 : f32 to vector<16x128xf32>
    %215 = arith.addf %213, %214 : vector<16x128xf32>
    %c5_33 = arith.constant 5 : index
    %216 = memref.load %arg1[%c5_33] : memref<128xf32, #tpu.memory_space<smem>>
    %217 = vector.broadcast %216 : f32 to vector<16x128xf32>
    %218 = arith.mulf %3, %217 : vector<16x128xf32>
    %c11 = arith.constant 11 : index
    %219 = memref.load %arg1[%c11] : memref<128xf32, #tpu.memory_space<smem>>
    %220 = vector.broadcast %219 : f32 to vector<16x128xf32>
    %221 = arith.mulf %4, %220 : vector<16x128xf32>
    %222 = arith.addf %218, %221 : vector<16x128xf32>
    %c17 = arith.constant 17 : index
    %223 = memref.load %arg1[%c17] : memref<128xf32, #tpu.memory_space<smem>>
    %224 = vector.broadcast %223 : f32 to vector<16x128xf32>
    %225 = arith.mulf %5, %224 : vector<16x128xf32>
    %226 = arith.addf %222, %225 : vector<16x128xf32>
    %c23 = arith.constant 23 : index
    %227 = memref.load %arg1[%c23] : memref<128xf32, #tpu.memory_space<smem>>
    %228 = vector.broadcast %227 : f32 to vector<16x128xf32>
    %229 = arith.mulf %6, %228 : vector<16x128xf32>
    %230 = arith.addf %226, %229 : vector<16x128xf32>
    %c29 = arith.constant 29 : index
    %231 = memref.load %arg1[%c29] : memref<128xf32, #tpu.memory_space<smem>>
    %232 = vector.broadcast %231 : f32 to vector<16x128xf32>
    %233 = arith.mulf %7, %232 : vector<16x128xf32>
    %234 = arith.addf %230, %233 : vector<16x128xf32>
    %c35 = arith.constant 35 : index
    %235 = memref.load %arg1[%c35] : memref<128xf32, #tpu.memory_space<smem>>
    %236 = vector.broadcast %235 : f32 to vector<16x128xf32>
    %237 = arith.mulf %8, %236 : vector<16x128xf32>
    %238 = arith.addf %234, %237 : vector<16x128xf32>
    %c41 = arith.constant 41 : index
    %239 = memref.load %arg1[%c41] : memref<128xf32, #tpu.memory_space<smem>>
    %240 = vector.broadcast %239 : f32 to vector<16x128xf32>
    %241 = arith.mulf %9, %240 : vector<16x128xf32>
    %242 = arith.addf %238, %241 : vector<16x128xf32>
    %c47 = arith.constant 47 : index
    %243 = memref.load %arg1[%c47] : memref<128xf32, #tpu.memory_space<smem>>
    %244 = vector.broadcast %243 : f32 to vector<16x128xf32>
    %245 = arith.mulf %10, %244 : vector<16x128xf32>
    %246 = arith.addf %242, %245 : vector<16x128xf32>
    %c53 = arith.constant 53 : index
    %247 = memref.load %arg1[%c53] : memref<128xf32, #tpu.memory_space<smem>>
    %248 = vector.broadcast %247 : f32 to vector<16x128xf32>
    %249 = arith.addf %246, %248 : vector<16x128xf32>
    %cst_34 = arith.constant 5.000000e-01 : f32
    %250 = vector.broadcast %cst_34 : f32 to vector<16x128xf32>
    %251 = arith.mulf %250, %249 : vector<16x128xf32>
    %252 = math.tanh %251 : vector<16x128xf32>
    %cst_35 = arith.constant 5.000000e-01 : f32
    %253 = vector.broadcast %cst_35 : f32 to vector<16x128xf32>
    %254 = arith.mulf %253, %252 : vector<16x128xf32>
    %cst_36 = arith.constant 5.000000e-01 : f32
    %255 = vector.broadcast %cst_36 : f32 to vector<16x128xf32>
    %256 = arith.addf %254, %255 : vector<16x128xf32>
    %c54 = arith.constant 54 : index
    %257 = memref.load %arg1[%c54] : memref<128xf32, #tpu.memory_space<smem>>
    %258 = vector.broadcast %257 : f32 to vector<16x128xf32>
    %259 = arith.mulf %51, %258 : vector<16x128xf32>
    %c58 = arith.constant 58 : index
    %260 = memref.load %arg1[%c58] : memref<128xf32, #tpu.memory_space<smem>>
    %261 = vector.broadcast %260 : f32 to vector<16x128xf32>
    %262 = arith.mulf %92, %261 : vector<16x128xf32>
    %263 = arith.addf %259, %262 : vector<16x128xf32>
    %c62 = arith.constant 62 : index
    %264 = memref.load %arg1[%c62] : memref<128xf32, #tpu.memory_space<smem>>
    %265 = vector.broadcast %264 : f32 to vector<16x128xf32>
    %266 = arith.mulf %133, %265 : vector<16x128xf32>
    %267 = arith.addf %263, %266 : vector<16x128xf32>
    %c66 = arith.constant 66 : index
    %268 = memref.load %arg1[%c66] : memref<128xf32, #tpu.memory_space<smem>>
    %269 = vector.broadcast %268 : f32 to vector<16x128xf32>
    %270 = arith.mulf %174, %269 : vector<16x128xf32>
    %271 = arith.addf %267, %270 : vector<16x128xf32>
    %c70 = arith.constant 70 : index
    %272 = memref.load %arg1[%c70] : memref<128xf32, #tpu.memory_space<smem>>
    %273 = vector.broadcast %272 : f32 to vector<16x128xf32>
    %274 = arith.mulf %215, %273 : vector<16x128xf32>
    %275 = arith.addf %271, %274 : vector<16x128xf32>
    %c74 = arith.constant 74 : index
    %276 = memref.load %arg1[%c74] : memref<128xf32, #tpu.memory_space<smem>>
    %277 = vector.broadcast %276 : f32 to vector<16x128xf32>
    %278 = arith.mulf %256, %277 : vector<16x128xf32>
    %279 = arith.addf %275, %278 : vector<16x128xf32>
    %c78 = arith.constant 78 : index
    %280 = memref.load %arg1[%c78] : memref<128xf32, #tpu.memory_space<smem>>
    %281 = vector.broadcast %280 : f32 to vector<16x128xf32>
    %282 = arith.addf %279, %281 : vector<16x128xf32>
    %cst_37 = arith.constant 5.000000e-01 : f32
    %283 = vector.broadcast %cst_37 : f32 to vector<16x128xf32>
    %284 = arith.mulf %283, %282 : vector<16x128xf32>
    %285 = math.tanh %284 : vector<16x128xf32>
    %cst_38 = arith.constant 5.000000e-01 : f32
    %286 = vector.broadcast %cst_38 : f32 to vector<16x128xf32>
    %287 = arith.mulf %286, %285 : vector<16x128xf32>
    %cst_39 = arith.constant 5.000000e-01 : f32
    %288 = vector.broadcast %cst_39 : f32 to vector<16x128xf32>
    %289 = arith.addf %287, %288 : vector<16x128xf32>
    %c55 = arith.constant 55 : index
    %290 = memref.load %arg1[%c55] : memref<128xf32, #tpu.memory_space<smem>>
    %291 = vector.broadcast %290 : f32 to vector<16x128xf32>
    %292 = arith.mulf %51, %291 : vector<16x128xf32>
    %c59 = arith.constant 59 : index
    %293 = memref.load %arg1[%c59] : memref<128xf32, #tpu.memory_space<smem>>
    %294 = vector.broadcast %293 : f32 to vector<16x128xf32>
    %295 = arith.mulf %92, %294 : vector<16x128xf32>
    %296 = arith.addf %292, %295 : vector<16x128xf32>
    %c63 = arith.constant 63 : index
    %297 = memref.load %arg1[%c63] : memref<128xf32, #tpu.memory_space<smem>>
    %298 = vector.broadcast %297 : f32 to vector<16x128xf32>
    %299 = arith.mulf %133, %298 : vector<16x128xf32>
    %300 = arith.addf %296, %299 : vector<16x128xf32>
    %c67 = arith.constant 67 : index
    %301 = memref.load %arg1[%c67] : memref<128xf32, #tpu.memory_space<smem>>
    %302 = vector.broadcast %301 : f32 to vector<16x128xf32>
    %303 = arith.mulf %174, %302 : vector<16x128xf32>
    %304 = arith.addf %300, %303 : vector<16x128xf32>
    %c71 = arith.constant 71 : index
    %305 = memref.load %arg1[%c71] : memref<128xf32, #tpu.memory_space<smem>>
    %306 = vector.broadcast %305 : f32 to vector<16x128xf32>
    %307 = arith.mulf %215, %306 : vector<16x128xf32>
    %308 = arith.addf %304, %307 : vector<16x128xf32>
    %c75 = arith.constant 75 : index
    %309 = memref.load %arg1[%c75] : memref<128xf32, #tpu.memory_space<smem>>
    %310 = vector.broadcast %309 : f32 to vector<16x128xf32>
    %311 = arith.mulf %256, %310 : vector<16x128xf32>
    %312 = arith.addf %308, %311 : vector<16x128xf32>
    %c79 = arith.constant 79 : index
    %313 = memref.load %arg1[%c79] : memref<128xf32, #tpu.memory_space<smem>>
    %314 = vector.broadcast %313 : f32 to vector<16x128xf32>
    %315 = arith.addf %312, %314 : vector<16x128xf32>
    %cst_40 = arith.constant 5.000000e-01 : f32
    %316 = vector.broadcast %cst_40 : f32 to vector<16x128xf32>
    %317 = arith.mulf %316, %315 : vector<16x128xf32>
    %318 = math.tanh %317 : vector<16x128xf32>
    %cst_41 = arith.constant 5.000000e-01 : f32
    %319 = vector.broadcast %cst_41 : f32 to vector<16x128xf32>
    %320 = arith.mulf %319, %318 : vector<16x128xf32>
    %cst_42 = arith.constant 5.000000e-01 : f32
    %321 = vector.broadcast %cst_42 : f32 to vector<16x128xf32>
    %322 = arith.addf %320, %321 : vector<16x128xf32>
    %c56 = arith.constant 56 : index
    %323 = memref.load %arg1[%c56] : memref<128xf32, #tpu.memory_space<smem>>
    %324 = vector.broadcast %323 : f32 to vector<16x128xf32>
    %325 = arith.mulf %51, %324 : vector<16x128xf32>
    %c60 = arith.constant 60 : index
    %326 = memref.load %arg1[%c60] : memref<128xf32, #tpu.memory_space<smem>>
    %327 = vector.broadcast %326 : f32 to vector<16x128xf32>
    %328 = arith.mulf %92, %327 : vector<16x128xf32>
    %329 = arith.addf %325, %328 : vector<16x128xf32>
    %c64 = arith.constant 64 : index
    %330 = memref.load %arg1[%c64] : memref<128xf32, #tpu.memory_space<smem>>
    %331 = vector.broadcast %330 : f32 to vector<16x128xf32>
    %332 = arith.mulf %133, %331 : vector<16x128xf32>
    %333 = arith.addf %329, %332 : vector<16x128xf32>
    %c68 = arith.constant 68 : index
    %334 = memref.load %arg1[%c68] : memref<128xf32, #tpu.memory_space<smem>>
    %335 = vector.broadcast %334 : f32 to vector<16x128xf32>
    %336 = arith.mulf %174, %335 : vector<16x128xf32>
    %337 = arith.addf %333, %336 : vector<16x128xf32>
    %c72 = arith.constant 72 : index
    %338 = memref.load %arg1[%c72] : memref<128xf32, #tpu.memory_space<smem>>
    %339 = vector.broadcast %338 : f32 to vector<16x128xf32>
    %340 = arith.mulf %215, %339 : vector<16x128xf32>
    %341 = arith.addf %337, %340 : vector<16x128xf32>
    %c76 = arith.constant 76 : index
    %342 = memref.load %arg1[%c76] : memref<128xf32, #tpu.memory_space<smem>>
    %343 = vector.broadcast %342 : f32 to vector<16x128xf32>
    %344 = arith.mulf %256, %343 : vector<16x128xf32>
    %345 = arith.addf %341, %344 : vector<16x128xf32>
    %c80 = arith.constant 80 : index
    %346 = memref.load %arg1[%c80] : memref<128xf32, #tpu.memory_space<smem>>
    %347 = vector.broadcast %346 : f32 to vector<16x128xf32>
    %348 = arith.addf %345, %347 : vector<16x128xf32>
    %cst_43 = arith.constant 5.000000e-01 : f32
    %349 = vector.broadcast %cst_43 : f32 to vector<16x128xf32>
    %350 = arith.mulf %349, %348 : vector<16x128xf32>
    %351 = math.tanh %350 : vector<16x128xf32>
    %cst_44 = arith.constant 5.000000e-01 : f32
    %352 = vector.broadcast %cst_44 : f32 to vector<16x128xf32>
    %353 = arith.mulf %352, %351 : vector<16x128xf32>
    %cst_45 = arith.constant 5.000000e-01 : f32
    %354 = vector.broadcast %cst_45 : f32 to vector<16x128xf32>
    %355 = arith.addf %353, %354 : vector<16x128xf32>
    %c57 = arith.constant 57 : index
    %356 = memref.load %arg1[%c57] : memref<128xf32, #tpu.memory_space<smem>>
    %357 = vector.broadcast %356 : f32 to vector<16x128xf32>
    %358 = arith.mulf %51, %357 : vector<16x128xf32>
    %c61 = arith.constant 61 : index
    %359 = memref.load %arg1[%c61] : memref<128xf32, #tpu.memory_space<smem>>
    %360 = vector.broadcast %359 : f32 to vector<16x128xf32>
    %361 = arith.mulf %92, %360 : vector<16x128xf32>
    %362 = arith.addf %358, %361 : vector<16x128xf32>
    %c65 = arith.constant 65 : index
    %363 = memref.load %arg1[%c65] : memref<128xf32, #tpu.memory_space<smem>>
    %364 = vector.broadcast %363 : f32 to vector<16x128xf32>
    %365 = arith.mulf %133, %364 : vector<16x128xf32>
    %366 = arith.addf %362, %365 : vector<16x128xf32>
    %c69 = arith.constant 69 : index
    %367 = memref.load %arg1[%c69] : memref<128xf32, #tpu.memory_space<smem>>
    %368 = vector.broadcast %367 : f32 to vector<16x128xf32>
    %369 = arith.mulf %174, %368 : vector<16x128xf32>
    %370 = arith.addf %366, %369 : vector<16x128xf32>
    %c73 = arith.constant 73 : index
    %371 = memref.load %arg1[%c73] : memref<128xf32, #tpu.memory_space<smem>>
    %372 = vector.broadcast %371 : f32 to vector<16x128xf32>
    %373 = arith.mulf %215, %372 : vector<16x128xf32>
    %374 = arith.addf %370, %373 : vector<16x128xf32>
    %c77 = arith.constant 77 : index
    %375 = memref.load %arg1[%c77] : memref<128xf32, #tpu.memory_space<smem>>
    %376 = vector.broadcast %375 : f32 to vector<16x128xf32>
    %377 = arith.mulf %256, %376 : vector<16x128xf32>
    %378 = arith.addf %374, %377 : vector<16x128xf32>
    %c81 = arith.constant 81 : index
    %379 = memref.load %arg1[%c81] : memref<128xf32, #tpu.memory_space<smem>>
    %380 = vector.broadcast %379 : f32 to vector<16x128xf32>
    %381 = arith.addf %378, %380 : vector<16x128xf32>
    %cst_46 = arith.constant 5.000000e-01 : f32
    %382 = vector.broadcast %cst_46 : f32 to vector<16x128xf32>
    %383 = arith.mulf %382, %381 : vector<16x128xf32>
    %384 = math.tanh %383 : vector<16x128xf32>
    %cst_47 = arith.constant 5.000000e-01 : f32
    %385 = vector.broadcast %cst_47 : f32 to vector<16x128xf32>
    %386 = arith.mulf %385, %384 : vector<16x128xf32>
    %cst_48 = arith.constant 5.000000e-01 : f32
    %387 = vector.broadcast %cst_48 : f32 to vector<16x128xf32>
    %388 = arith.addf %386, %387 : vector<16x128xf32>
    %c82 = arith.constant 82 : index
    %389 = memref.load %arg1[%c82] : memref<128xf32, #tpu.memory_space<smem>>
    %390 = vector.broadcast %389 : f32 to vector<16x128xf32>
    %391 = arith.mulf %289, %390 : vector<16x128xf32>
    %c83 = arith.constant 83 : index
    %392 = memref.load %arg1[%c83] : memref<128xf32, #tpu.memory_space<smem>>
    %393 = vector.broadcast %392 : f32 to vector<16x128xf32>
    %394 = arith.mulf %322, %393 : vector<16x128xf32>
    %395 = arith.addf %391, %394 : vector<16x128xf32>
    %c84 = arith.constant 84 : index
    %396 = memref.load %arg1[%c84] : memref<128xf32, #tpu.memory_space<smem>>
    %397 = vector.broadcast %396 : f32 to vector<16x128xf32>
    %398 = arith.mulf %355, %397 : vector<16x128xf32>
    %399 = arith.addf %395, %398 : vector<16x128xf32>
    %c85 = arith.constant 85 : index
    %400 = memref.load %arg1[%c85] : memref<128xf32, #tpu.memory_space<smem>>
    %401 = vector.broadcast %400 : f32 to vector<16x128xf32>
    %402 = arith.mulf %388, %401 : vector<16x128xf32>
    %403 = arith.addf %399, %402 : vector<16x128xf32>
    %c86 = arith.constant 86 : index
    %404 = memref.load %arg1[%c86] : memref<128xf32, #tpu.memory_space<smem>>
    %405 = vector.broadcast %404 : f32 to vector<16x128xf32>
    %406 = arith.addf %403, %405 : vector<16x128xf32>
    %cst_49 = arith.constant 5.000000e-01 : f32
    %407 = vector.broadcast %cst_49 : f32 to vector<16x128xf32>
    %408 = arith.mulf %407, %406 : vector<16x128xf32>
    %409 = math.tanh %408 : vector<16x128xf32>
    %cst_50 = arith.constant 5.000000e-01 : f32
    %410 = vector.broadcast %cst_50 : f32 to vector<16x128xf32>
    %411 = arith.mulf %410, %409 : vector<16x128xf32>
    %cst_51 = arith.constant 5.000000e-01 : f32
    %412 = vector.broadcast %cst_51 : f32 to vector<16x128xf32>
    %413 = arith.addf %411, %412 : vector<16x128xf32>
    %414 = tpu.transpose %413, [1, 0] : vector<16x128xf32> -> vector<128x16xf32>
    %c0_52 = arith.constant 0 : index
    %c0_53 = arith.constant 0 : index
    %415 = vector.load %arg3[%c0_52, %c0_53] : memref<128x16xf32, #tpu.memory_space<vmem>>, vector<128x16xf32>
    tpu.vector_store %arg3[%c0_52, %c0_53], %414 {strides = array<i32>} : memref<128x16xf32, #tpu.memory_space<vmem>>, vector<128x16xf32>,
    return
  }
  func.func @transform_0(%arg0: i32) -> i32 {
    %c0_i32 = arith.constant 0 : i32
    %c0_i32_0 = arith.constant 0 : i32
    return %c0_i32 : i32
  }
  func.func @transform_1(%arg0: i32) -> (i32, i32) {
    %c0_i32 = arith.constant 0 : i32
    %c0_i32_0 = arith.constant 0 : i32
    return %arg0, %c0_i32 : i32, i32
  }
  func.func @transform_2(%arg0: i32) -> (i32, i32) {
    %c0_i32 = arith.constant 0 : i32
    %c0_i32_0 = arith.constant 0 : i32
    return %arg0, %c0_i32 : i32, i32
  }
}

</mosaic_0001>

<bundles_post_ra>
// kernel: tpu_custom_call.1
= control target key start
LH: loop header
LB: loop body
LE: loop exit
PB: predicated region body
PF: predicated region fallthrough
CT: control target
= control target key end

     0   :  { %s2244_s0 = inlined_call_operand.hbm [shape: f32[128], index: 0, kind: input, shape index: {}]   ;;  %s2245_s1 = inlined_call_operand.hbm [shape: f32[256,128], index: 1, kind: input, shape index: {}]   ;;  %s2246_s2 = inlined_call_operand.vmem [shape: f32[256,16], index: 2, kind: output, shape index: {}]  }
   0x1   :  { %2398 = sst [smem:[#allocation81_spill]] %s2244_s0 }
   0x2   :  { %2399 = sst [smem:[#allocation82_spill]] %s2245_s1 }
   0x3   :  { %2400 = sst [smem:[#allocation83_spill]] %s2246_s2 }
   0x4   :  { %7 = vsyncpa [#allocation5], 0 }
   0x5   :  { %8 = vsyncpa [#allocation4], 0 }
   0x6   :  { %10 = vsyncpa [#allocation4 + $0x1], 0  ;;  %s1300_s9 = smov 0   ;;  %s1302_s10 = smov 0  }
   0x7   :  { %s1304_s11 = smov 0   ;;  %s1306_s12 = smov 0  }
   0x8 LB: > { %2401 = sst [smem:[#allocation9_spill]] %s1271_s10  ;;  %s2250_s13 = sadd.s32 4294967295, %s1279_s12   ;;  %s1279_s12 = sphi %s1306_s12, %s2708_s12   ;;  %s1275_s11 = sphi %s1304_s11, %s2711_s11   ;;  %s1271_s10 = sphi %s1302_s10, %s2710_s10   ;;  %s1267_s9 = sphi %s1300_s9, %s2709_s9  }
   0x9   : > { %2402 = sst [smem:[#allocation10_spill]] %s1275_s11  ;;  %s1320_s14 = sadd.s32 1, %s1279_s12  }
   0xa   : > { %2403 = sst [smem:[#allocation11_spill]] %s1279_s12  ;;  %s41_s15 = ssub.s32 %s1279_s12, %s1320_s14 }
   0xb   : > { %2404 = sst [smem:[#allocation12_spill]] %s1320_s14  ;;  %s44_s16 = sadd.s32 1, %s1275_s11 }
   0xc   : > { %p42_p0 = scmp.eq.s32.totalorder %s41_s15, 0  ;;  %p51_p1 = scmp.ne.s32.totalorder %s1275_s11, %s1271_s10 }
   0xd   : > { %p52_p2 = scmp.eq.s32.totalorder %s1279_s12, 0  ;;  %p57_p3 = scmp.ne.s32.totalorder %s1271_s10, %s1267_s9 }
   0xe   : > { %s1330_s17 = scalar_select %p42_p0, %s1275_s11, %s44_s16  }
   0xf   : > { %p53_p4 = por %p52_p2, %p51_p1  ;;  %p1334_p5 = scmp.eq.s32.totalorder %s2250_s13, 0 }
  0x10   : > { %2405 = sst [smem:[#allocation13_spill]] %s1330_s17  ;;  %p1001_p6 = scmp.ge.s32.totalorder %s1279_s12, 1 }
  0x11   : > { %s2406_s18 = scalar_select %p1334_p5, 1, 0 }
  0x12   : > { %p94_p7 = scmp.lt.s32.totalorder %s1279_s12, 3  ;;  %p1342_p8 = por %p1334_p5, %p57_p3 }
  0x13   : > { %p1116_p10 = scmp.lt.s32.totalorder %s1279_s12, 2  ;;  %s116_s21 = sand.u32 1, %s1275_s11  }
  0x14   : > { %s2407_s19 = scalar_select %p1342_p8, 1, 0 }
  0x15   : > { %p1346_p9 = pnand %p1001_p6, %p94_p7  ;;  %p1354_p12 = pnand %p1116_p10, %p53_p4 }
  0x16   : > { %s1004_s23 = sshll.u32 %s116_s21, 7  ;;  %s1100_s24 = sshll.u32 %s1279_s12, 11 }
  0x17   : > { %p1107_p11 = pneg %p1346_p9  ;;  %s2410_s0 = sld [smem:[#allocation81_spill]] }
  0x19   : > { %p1108_p13 = pnand %p1107_p11, %p1334_p5 }
  0x1b   : > { %p1200_p1 = pneg %p1108_p13 }
  0x1d   : > { %s1198_s27 = scalar_lea.hbm %s2410_s0, 16 }
  0x1e   : > { %p1199_p0 = scmp.ne.s32.totalorder %s2410_s0, %s1198_s27  ;;  %p1205_p4 = scmp.lt.u32.totalorder %s1198_s27, %s2410_s0 }
  0x20   : > { %p1201_p2 = pnand %p1200_p1, %p1199_p0 }
  0x22   : > { %p1202_p3 = pneg %p1201_p2 }
  0x24   : > { %p1207_p6 = pnand %p1205_p4, %p1202_p3 }
  0x26   : > { %1210 = shalt.err (!%p1207_p6)
}
  0x27   : > { %s1281_s4 = smov [#allocation3]   ;;  %s2411_s1 = sld [smem:[#allocation82_spill]] }
  0x28   : > { %1110 = dma.hbm_to_smem (!%p1108_p13), %s2410_s0, 16, %s1281_s4, [#allocation5]  }
  0x29   : > { %s120_s15 = scalar_lea.vmem [#allocation6], %s1004_s23  ;;  %s1380_s25 = scalar_lea.sflag [#allocation4], %s116_s21 }
  0x2a   : > { %s127_s16 = sshll.u32 %s120_s15, 4  ;;  %p1213_p10 = pneg %p1354_p12  ;;  %s1378_s16 = int_to_ptr.vmem [resolvable:$true] %s127_s16 }
  0x2d   : > { %s1376_s9 = scalar_lea.hbm %s2411_s1, %s1100_s24  ;;  %s1216_s28 = scalar_lea.hbm %s2411_s1, 4096 }
  0x2e   : > { %s1211_s26 = scalar_lea.hbm %s1376_s9, 2048  ;;  %p1217_p0 = scmp.lt.u32.totalorder %s1376_s9, %s2411_s1 }
  0x2f   : > { %p1212_p7 = scmp.ne.s32.totalorder %s1376_s9, %s1211_s26  ;;  %p1218_p1 = scmp.lt.u32.totalorder %s1216_s28, %s1211_s26 }
  0x30   : > { %p1220_p3 = scmp.lt.u32.totalorder %s1211_s26, %s1376_s9 }
  0x31   : > { %p1214_p11 = pnand %p1213_p10, %p1212_p7  ;;  %p1219_p2 = por %p1218_p1, %p1217_p0 }
  0x33   : > { %p1215_p13 = pneg %p1214_p11  ;;  %p1221_p4 = por %p1220_p3, %p1219_p2 }
  0x35   : > { %p1222_p6 = pnand %p1221_p4, %p1215_p13 }
  0x37   : > { %1225 = shalt.err (!%p1222_p6)
}
  0x38   : > { %s1226_s21 = scalar_lea.vmem %s1378_s16, 2048  ;;  %s1282_s23 = smov [#allocation6]  }
  0x39   : > { %p1227_p7 = scmp.ne.s32.totalorder %s1378_s16, %s1226_s21  ;;  %s1231_s3 = sshll.u32 %s1282_s23, 4  ;;  %s1232_s3 = int_to_ptr.vmem [resolvable:$false] %s1231_s3 }
  0x3a   : > { %s1233_s4 = scalar_lea.vmem %s1232_s3, 4096  ;;  %p1234_p5 = scmp.lt.s32.totalorder %s1378_s16, %s1232_s3 }
  0x3b   : > { %p1229_p11 = pnand %p1227_p7, %p1213_p10  ;;  %p1235_p0 = scmp.lt.s32.totalorder %s1233_s4, %s1226_s21 }
  0x3d   : > { %p1230_p8 = pneg %p1229_p11  ;;  %p1236_p1 = por %p1235_p0, %p1234_p5 }
  0x3f   : > { %p1237_p2 = pnand %p1236_p1, %p1230_p8 }
  0x41   : > { %1240 = shalt.err (!%p1237_p2)
}
  0x42   : > { %s1283_s5 = smov 128   ;;  %s1284_s6 = smov 8  }
  0x43   : > { %1114 = dma.hbm_to_vmem [thread:$0]  (!%p1354_p12), %s1376_s9, 2048, %s1378_s16, %s1380_s25, %s1283_s5, %s1283_s5, %s1284_s6  }
  0x44   : > { %139 = sbr.rel (%p1346_p9) target bundleno = 608 (0x260), region = 28 }
  0x4b   : > { %p2412_p10 = scmp.ne.s32.totalorder %s2406_s18, 0 }
  0x4d   : > { %1258 = dma.done.wait (%p2412_p10), [#allocation5], 16  }
  0x4e   : > { %1260 = vsyncadd (%p2412_p10), [#allocation5], 4294967280  ;;  %s145_s7 = sand.u32 1, %s1271_s10   ;;  %p2413_p5 = scmp.ne.s32.totalorder %s2407_s19, 0 }
  0x4f   : > { %s1009_s8 = sshll.u32 %s145_s7, 7  ;;  %s146_s15 = scalar_lea.sflag [#allocation4], %s145_s7 }
  0x50   : > { %s1415_s26 = scalar_lea.vmem [#allocation6], %s1009_s8 }
  0x51   : > { %1262 = dma.done.wait (%p2413_p5), %s146_s15, 2048  }
  0x52   : > { %1264 = vsyncadd (%p2413_p5), %s146_s15, 4294965248 }
  0x53   : > { %154 = sfence }
  0x54   : > { %v178_v0 = vld [vmem:[%s1415_s26] sm:$0xff]  ;;  %v179_v1 = vld [vmem:[%s1415_s26 + $0x8] sm:$0xff]  ;;  %v180_v2 = vld [vmem:[%s1415_s26 + $0x10] sm:$0xff]  ;;  %s1437_s18 = sld [smem:[#allocation3]]  ;;  %s1439_s19 = sld [smem:[#allocation3 + $0x6]]  ;;  %vm903_vm0 = vcmask 130048  }
  0x55   : > { %194 = vxpose.xlu0.b32.start [1/16] %v178_v0, 128  ;;  %v181_v3 = vld [vmem:[%s1415_s26 + $0x18] sm:$0xff]  ;;  %v182_v4 = vld [vmem:[%s1415_s26 + $0x20] sm:$0xff]  ;;  %v183_v5 = vld [vmem:[%s1415_s26 + $0x28] sm:$0xff]  ;;  %s1441_s20 = sld [smem:[#allocation3 + $0xc]]  ;;  %s1443_s22 = sld [smem:[#allocation3 + $0x1]] }
  0x56   : > { %v184_v6 = vld [vmem:[%s1415_s26 + $0x30] sm:$0xff]  ;;  %v185_v7 = vld [vmem:[%s1415_s26 + $0x38] sm:$0xff]  ;;  %v186_v8 = vld [vmem:[%s1415_s26 + $0x40] sm:$0xff]  ;;  %s1445_s9 = sld [smem:[#allocation3 + $0x7]]  ;;  %s1447_s16 = sld [smem:[#allocation3 + $0xd]] }
  0x57   : > { %v187_v9 = vld [vmem:[%s1415_s26 + $0x48] sm:$0xff]  ;;  %v188_v10 = vld [vmem:[%s1415_s26 + $0x50] sm:$0xff]  ;;  %v189_v11 = vld [vmem:[%s1415_s26 + $0x58] sm:$0xff]  ;;  %s1449_s25 = sld [smem:[#allocation3 + $0x2]]  ;;  %s1451_s24 = sld [smem:[#allocation3 + $0x8]] }
  0x58   : > { %v190_v12 = vld [vmem:[%s1415_s26 + $0x60] sm:$0xff]  ;;  %v191_v13 = vld [vmem:[%s1415_s26 + $0x68] sm:$0xff]  ;;  %v192_v14 = vld [vmem:[%s1415_s26 + $0x70] sm:$0xff]  ;;  %s1453_s27 = sld [smem:[#allocation3 + $0x12]]  ;;  %s1455_s28 = sld [smem:[#allocation3 + $0x13]] }
  0x59   : > { %195 = vxpose.xlu0.b32.cont [2/16] %v179_v1, 128  ;;  %v193_v15 = vld [vmem:[%s1415_s26 + $0x78] sm:$0xff]  ;;  %s1457_s29 = sld [smem:[#allocation3 + $0xe]]  ;;  %s1459_s30 = sld [smem:[#allocation3 + $0x3]] }
  0x5a   : > { %2414 = sst [smem:[#allocation14_spill]] %s1437_s18  ;;  %s1461_s21 = sld [smem:[#allocation3 + $0x9]]  ;;  %v2340_v22 = vstv %s1437_s18  ;;  %v310_v23 = vstv %s1439_s19 }
  0x5b   : > { %2415 = sst [smem:[#allocation15_spill]] %s1439_s19  ;;  %s1463_s23 = sld [smem:[#allocation3 + $0x18]]  ;;  %v316_v24 = vstv %s1441_s20  ;;  %v364_v25 = vstv %s1443_s22 }
  0x5c   : > { %2416 = sst [smem:[#allocation16_spill]] %s1441_s20  ;;  %s1465_s3 = sld [smem:[#allocation3 + $0x1e]]  ;;  %v2354_v26 = vstv %s1445_s9  ;;  %v374_v27 = vstv %s1447_s16 }
  0x5d   : > { %196 = vxpose.xlu0.b32.cont [3/16] %v180_v2, 128  ;;  %2417 = sst [smem:[#allocation17_spill]] %s1443_s22  ;;  %s1467_s4 = sld [smem:[#allocation3 + $0x24]]  ;;  %v2351_v28 = vstv %s1449_s25  ;;  %v2355_v29 = vstv %s1451_s24 }
  0x5e   : > { %2418 = sst [smem:[#allocation18_spill]] %s1445_s9  ;;  %s1469_s5 = sld [smem:[#allocation3 + $0x2a]]  ;;  %v322_v31 = vstv %s1453_s27  ;;  %v380_v32 = vstv %s1455_s28 }
  0x5f   : > { %2419 = sst [smem:[#allocation19_spill]] %s1447_s16  ;;  %s1471_s6 = sld [smem:[#allocation3 + $0x19]]  ;;  %v432_v33 = vstv %s1457_s29  ;;  %v480_v34 = vstv %s1459_s30 }
  0x60   : > { %2420 = sst [smem:[#allocation20_spill]] %s1449_s25  ;;  %s1473_s7 = sld [smem:[#allocation3 + $0x1f]]  ;;  %v484_v35 = vstv %s1461_s21 }
  0x61   : > { %197 = vxpose.xlu0.b32.cont [4/16] %v181_v3, 128  ;;  %2421 = sst [smem:[#allocation21_spill]] %s1451_s24  ;;  %s1475_s8 = sld [smem:[#allocation3 + $0x25]]  ;;  %v328_v36 = vstv %s1463_s23 }
  0x62   : > { %2422 = sst [smem:[#allocation22_spill]] %s1453_s27  ;;  %s1477_s15 = sld [smem:[#allocation3 + $0x2b]]  ;;  %v334_v37 = vstv %s1465_s3 }
  0x63   : > { %2423 = sst [smem:[#allocation23_spill]] %s1455_s28  ;;  %s1479_s26 = sld [smem:[#allocation3 + $0x14]]  ;;  %v340_v38 = vstv %s1467_s4 }
  0x64   : > { %2424 = sst [smem:[#allocation24_spill]] %s1457_s29  ;;  %s1481_s13 = sld [smem:[#allocation3 + $0x1a]]  ;;  %v2362_v39 = vstv %s1469_s5 }
  0x65   : > { %198 = vxpose.xlu0.b32.cont [5/16] %v182_v4, 128  ;;  %2425 = sst [smem:[#allocation25_spill]] %s1459_s30  ;;  %s1485_s1 = sld [smem:[#allocation3 + $0x26]]  ;;  %v2363_v40 = vstv %s1471_s6 }
  0x66   : > { %2426 = sst [smem:[#allocation26_spill]] %s1461_s21  ;;  %s1483_s0 = sld [smem:[#allocation3 + $0x20]]  ;;  %v2366_v41 = vstv %s1473_s7 }
  0x67   : > { %2427 = sst [smem:[#allocation27_spill]] %s1463_s23  ;;  %s1487_s17 = sld [smem:[#allocation3 + $0x2c]]  ;;  %v2365_v42 = vstv %s1475_s8 }
  0x68   : > { %2428 = sst [smem:[#allocation28_spill]] %s1465_s3  ;;  %s1489_s11 = sld [smem:[#allocation3 + $0xf]]  ;;  %v404_v43 = vstv %s1477_s15 }
  0x69   : > { %199 = vxpose.xlu0.b32.cont [6/16] %v183_v5, 128  ;;  %2429 = sst [smem:[#allocation29_spill]] %s1467_s4  ;;  %s1491_s10 = sld [smem:[#allocation3 + $0x15]] }
  0x6a   : > { %2430 = sst [smem:[#allocation30_spill]] %s1469_s5  ;;  %s1493_s14 = sld [smem:[#allocation3 + $0x1b]] }
  0x6b   : > { %2431 = sst [smem:[#allocation31_spill]] %s1471_s6  ;;  %s1495_s2 = sld [smem:[#allocation3 + $0x21]] }
  0x6c   : > { %2432 = sst [smem:[#allocation32_spill]] %s1473_s7  ;;  %s1551_s20 = sld [smem:[#allocation3 + $0x33]] }
  0x6d   : > { %200 = vxpose.xlu0.b32.cont [7/16] %v184_v6, 128  ;;  %2433 = sst [smem:[#allocation33_spill]] %s1475_s8  ;;  %s1497_s12 = sld [smem:[#allocation3 + $0x27]]  ;;  %v462_v49 = vstv %s1487_s17 }
  0x6e   : > { %2434 = sst [smem:[#allocation34_spill]] %s1477_s15  ;;  %s1545_s18 = sld [smem:[#allocation3 + $0x2f]] }
  0x6f   : > { %2435 = sst [smem:[#allocation35_spill]] %s1479_s26  ;;  %s1499_s26 = sld [smem:[#allocation3 + $0x2d]] }
  0x70   : > { %2436 = sst [smem:[#allocation36_spill]] %s1481_s13  ;;  %s1501_s13 = sld [smem:[#allocation3 + $0x4]]  ;;  %v2389_v52 = vstv %s1493_s14 }
  0x71   : > { %201 = vxpose.xlu0.b32.cont [8/16] %v185_v7, 128  ;;  %2437 = sst [smem:[#allocation37_spill]] %s1483_s0  ;;  %s1503_s0 = sld [smem:[#allocation3 + $0xa]] }
  0x72   : > { %2438 = sst [smem:[#allocation38_spill]] %s1485_s1  ;;  %s1505_s1 = sld [smem:[#allocation3 + $0x10]] }
  0x73   : > { %2439 = sst [smem:[#allocation39_spill]] %s1487_s17  ;;  %s2465_s16 = sld [smem:[#allocation35_spill]] }
  0x74   : > { %2440 = sst [smem:[#allocation40_spill]] %s1489_s11  ;;  %s1507_s11 = sld [smem:[#allocation3 + $0x16]] }
  0x75   : > { %202 = vxpose.xlu0.b32.cont [9/16] %v186_v8, 128  ;;  %2441 = sst [smem:[#allocation41_spill]] %s1491_s10  ;;  %s1509_s10 = sld [smem:[#allocation3 + $0x1c]] }
  0x76   : > { %2442 = sst [smem:[#allocation42_spill]] %s1493_s14  ;;  %s1553_s9 = sld [smem:[#allocation3 + $0x34]] }
  0x77   : > { %2443 = sst [smem:[#allocation43_spill]] %s1495_s2  ;;  %s2467_s24 = sld [smem:[#allocation36_spill]] }
  0x78   : > { %2444 = sst [smem:[#allocation44_spill]] %s1497_s12  ;;  %s1511_s2 = sld [smem:[#allocation3 + $0x22]] }
  0x79   : > { %203 = vxpose.xlu0.b32.cont [10/16] %v187_v9, 128  ;;  %2445 = sst [smem:[#allocation45_spill]] %s1499_s26  ;;  %s1513_s12 = sld [smem:[#allocation3 + $0x28]]  ;;  %v2364_v44 = vstv %s2465_s16 }
  0x7a   : > { %2446 = sst [smem:[#allocation46_spill]] %s1501_s13  ;;  %s1515_s26 = sld [smem:[#allocation3 + $0x2e]] }
  0x7b   : > { %2447 = sst [smem:[#allocation47_spill]] %s1503_s0  ;;  %s1517_s0 = sld [smem:[#allocation3 + $0x5]] }
  0x7c   : > { %2448 = sst [smem:[#allocation48_spill]] %s1505_s1  ;;  %s1519_s1 = sld [smem:[#allocation3 + $0x30]] }
  0x7d   : > { %204 = vxpose.xlu0.b32.cont [11/16] %v188_v10, 128  ;;  %2449 = sst [smem:[#allocation49_spill]] %s1507_s11  ;;  %s1521_s11 = sld [smem:[#allocation3 + $0xb]]  ;;  %v444_v45 = vstv %s2467_s24 }
  0x7e   : > { %2450 = sst [smem:[#allocation50_spill]] %s1509_s10  ;;  %s1525_s13 = sld [smem:[#allocation3 + $0x17]] }
  0x7f   : > { %2451 = sst [smem:[#allocation51_spill]] %s1511_s2  ;;  %s1523_s10 = sld [smem:[#allocation3 + $0x11]] }
  0x80   : > { %2452 = sst [smem:[#allocation52_spill]] %s1513_s12  ;;  %s1527_s12 = sld [smem:[#allocation3 + $0x31]] }
  0x81   : > { %205 = vxpose.xlu0.b32.cont [12/16] %v189_v11, 128  ;;  %2453 = sst [smem:[#allocation53_spill]] %s1515_s26  ;;  %s1529_s26 = sld [smem:[#allocation3 + $0x1d]] }
  0x82   : > { %2454 = sst [smem:[#allocation54_spill]] %s1517_s0  ;;  %s1537_s0 = sld [smem:[#allocation3 + $0x29]]  ;;  %v352_v1 = vstv %s1519_s1 }
  0x83   : > { %2455 = sst [smem:[#allocation55_spill]] %s1519_s1  ;;  %s2468_s25 = sld [smem:[#allocation37_spill]] }
  0x84   : > { %2456 = sst [smem:[#allocation56_spill]] %s1521_s11  ;;  %s1535_s11 = sld [smem:[#allocation3 + $0x23]] }
  0x85   : > { %206 = vxpose.xlu0.b32.cont [13/16] %v190_v12, 128  ;;  %2457 = sst [smem:[#allocation57_spill]] %s1523_s10  ;;  %s2469_s22 = sld [smem:[#allocation38_spill]]  ;;  %v2376_v4 = vstv %s1523_s10 }
  0x86   : > { %2458 = sst [smem:[#allocation58_spill]] %s1525_s13  ;;  %s1543_s13 = sld [smem:[#allocation3 + $0x32]]  ;;  %v2391_v5 = vstv %s1527_s12 }
  0x87   : > { %2459 = sst [smem:[#allocation59_spill]] %s1527_s12  ;;  %s1559_s19 = sld [smem:[#allocation3 + $0x35]] }
  0x88   : > { %2460 = sst [smem:[#allocation60_spill]] %s1529_s26  ;;  %s1561_s28 = sld [smem:[#allocation3 + $0x36]] }
  0x89   : > { %207 = vxpose.xlu0.b32.cont [14/16] %v191_v13, 128  ;;  %2462 = sst [smem:[#allocation62_spill]] %s1537_s0  ;;  %s2472_s30 = sld [smem:[#allocation40_spill]]  ;;  %v450_v46 = vstv %s2468_s25 }
  0x8a   : > { %2461 = sst [smem:[#allocation61_spill]] %s1535_s11  ;;  %s2473_s29 = sld [smem:[#allocation41_spill]] }
  0x8b   : > { %2464 = sst [smem:[#allocation64_spill]] %s1545_s18  ;;  %s1567_s27 = sld [smem:[#allocation3 + $0x3a]]  ;;  %v456_v48 = vstv %s2469_s22 }
  0x8c   : > { %2463 = sst [smem:[#allocation63_spill]] %s1543_s13  ;;  %s2476_s21 = sld [smem:[#allocation43_spill]]  ;;  %v2388_v10 = vstv %s1543_s13 }
  0x8d   : > { %208 = vxpose.xlu0.b32.cont [15/16] %v192_v14, 128  ;;  %2466 = sst [smem:[#allocation65_spill]] %s1553_s9  ;;  %s1569_s9 = sld [smem:[#allocation3 + $0x3e]] }
  0x8e   : > { %2470 = sst [smem:[#allocation66_spill]] %s1559_s19  ;;  %s2477_s4 = sld [smem:[#allocation44_spill]] }
  0x8f   : > { %2471 = sst [smem:[#allocation67_spill]] %s1561_s28  ;;  %s2478_s3 = sld [smem:[#allocation45_spill]]  ;;  %v490_v50 = vstv %s2472_s30 }
  0x90   : > { %s1575_s23 = sld [smem:[#allocation3 + $0x42]]  ;;  %s2480_s28 = sld [smem:[#allocation46_spill]]  ;;  %v2390_v51 = vstv %s2473_s29 }
  0x91   : > { %209 = vxpose.xlu0.b32.end [16/16] %v193_v15, 128  ;;  %2474 = sst [smem:[#allocation68_spill]] %s1567_s27  ;;  %s1577_s5 = sld [smem:[#allocation3 + $0x46]] }
  0x92   : > { %s2482_s6 = sld [smem:[#allocation47_spill]]  ;;  %s2483_s8 = sld [smem:[#allocation48_spill]]  ;;  %v2387_v53 = vstv %s2476_s21 }
  0x93   : > { %2475 = sst [smem:[#allocation69_spill]] %s1569_s9  ;;  %s2484_s7 = sld [smem:[#allocation49_spill]] }
  0x94   : > { %s2485_s9 = sld [smem:[#allocation50_spill]]  ;;  %s1583_s15 = sld [smem:[#allocation3 + $0x4a]]  ;;  %v2385_v54 = vstv %s2477_s4 }
  0x95   : > { %s1585_s16 = sld [smem:[#allocation3 + $0x37]]  ;;  %v2383_v55 = vstv %s2478_s3  ;;  %s2491_s22 = sld [smem:[#allocation54_spill]] }
  0x96   : > { %2479 = sst [smem:[#allocation70_spill]] %s1575_s23  ;;  %s1593_s17 = sld [smem:[#allocation3 + $0x3f]]  ;;  %v2386_v56 = vstv %s2480_s28 }
  0x97   : > { %2481 = sst [smem:[#allocation71_spill]] %s1577_s5  ;;  %s1591_s5 = sld [smem:[#allocation3 + $0x3b]] }
  0x98   : > { %s2493_s29 = sld [smem:[#allocation56_spill]]  ;;  %v2368_v57 = vstv %s2482_s6  ;;  %v2381_v58 = vstv %s2483_s8  ;;  %s2494_s30 = sld [smem:[#allocation58_spill]] }
  0x99   : > { %v2379_v59 = vstv %s2484_s7  ;;  %s1601_s21 = sld [smem:[#allocation3 + $0x47]]  ;;  %s1607_s3 = sld [smem:[#allocation3 + $0x4b]] }
  0x9a   : > { %2486 = sst [smem:[#allocation72_spill]] %s1583_s15  ;;  %v2377_v60 = vstv %s2485_s9  ;;  %s1609_s4 = sld [smem:[#allocation3 + $0x38]] }
  0x9b   : > { %2487 = sst [smem:[#allocation73_spill]] %s1585_s16  ;;  %s1599_s16 = sld [smem:[#allocation3 + $0x43]]  ;;  %v2380_v2 = vstv %s2491_s22 }
  0x9c   : > { %2492 = sst [smem:[#allocation75_spill]] %s1593_s17  ;;  %s2499_s7 = sld [smem:[#allocation65_spill]] }
  0x9d   : > { %2490 = sst [smem:[#allocation74_spill]] %s1591_s5  ;;  %s1619_s24 = sld [smem:[#allocation3 + $0x3c]] }
  0x9e   : > { %v2378_v3 = vstv %s2493_s29  ;;  %s1621_s25 = sld [smem:[#allocation3 + $0x40]]  ;;  %s1627_s10 = sld [smem:[#allocation3 + $0x44]] }
  0x9f   : > { %2496 = sst [smem:[#allocation76_spill]] %s1601_s21  ;;  %s2507_s18 = sld [smem:[#allocation14_spill]] }
  0xa0   : > { %2497 = sst [smem:[#allocation77_spill]] %s1607_s3  ;;  %s2521_s19 = sld [smem:[#allocation30_spill]] }
  0xa1   : > { %2495 = sst [smem:[#allocation58_spill]] %s1599_s16  ;;  %s2522_s9 = sld [smem:[#allocation31_spill]] }
  0xa2   : > { %2498 = sst [smem:[#allocation78_spill]] %s1609_s4  ;;  %s2525_s17 = sld [smem:[#allocation33_spill]] }
  0xa3   : > { %2501 = sst [smem:[#allocation65_spill]] %s1619_s24  ;;  %s1772_s8 = sld [smem:[#allocation3 + $0x4e]] }
  0xa4   : > { %2502 = sst [smem:[#allocation79_spill]] %s1621_s25  ;;  %s1765_s28 = sld [smem:[#allocation3 + $0x48]] }
  0xa5   : > { %2505 = sst [smem:[#allocation80_spill]] %s1627_s10  ;;  %s1774_s24 = sld [smem:[#allocation3 + $0x4c]] }
  0xa6   : > { %s1784_s16 = sld [smem:[#allocation3 + $0x39]]  ;;  %s1786_s1 = sld [smem:[#allocation3 + $0x3d]] }
  0xa7   : > { %s2543_s23 = sld [smem:[#allocation51_spill]]  ;;  %s1791_s12 = sld [smem:[#allocation3 + $0x41]] }
  0xa8   : > { %s1793_s11 = sld [smem:[#allocation3 + $0x45]]  ;;  %s1800_s29 = sld [smem:[#allocation3 + $0x4f]] }
  0xa9   : > { %2540 = sst [smem:[#allocation14_spill]] %s1772_s8  ;;  %s1802_s6 = sld [smem:[#allocation3 + $0x49]] }
  0xaa   : > { %s1810_s14 = sld [smem:[#allocation3 + $0x50]]  ;;  %s1812_s21 = sld [smem:[#allocation3 + $0x4d]] }
  0xab   : > { %s2550_s13 = sld [smem:[#allocation53_spill]]  ;;  %s2576_s22 = sld [smem:[#allocation73_spill]] }
  0xac   : > { %s2552_s27 = sld [smem:[#allocation61_spill]]  ;;  %s2580_s4 = sld [smem:[#allocation74_spill]] }
  0xad   : > { %2544 = sst [smem:[#allocation15_spill]] %s1791_s12  ;;  %s2579_s3 = sld [smem:[#allocation69_spill]] }
  0xae   : > { %2545 = sst [smem:[#allocation17_spill]] %s1793_s11  ;;  %s2581_s10 = sld [smem:[#allocation75_spill]] }
  0xaf   : > { %2546 = sst [smem:[#allocation16_spill]] %s1800_s29  ;;  %s2582_s5 = sld [smem:[#allocation65_spill]] }
  0xb0   : > { %2549 = sst [smem:[#allocation22_spill]] %s1810_s14  ;;  %s2588_s2 = sld [smem:[#allocation58_spill]] }
  0xb1   : > { %s2600_s15 = sld [smem:[#allocation32_spill]] }
  0xd5   : > { %v210_v16 = vpop.trf.xlu0 }
  0xd6   : > { %226 = vst [vmem:[#allocation2] sm:$0xff] %v210_v16 }
  0xd9   : > { %v211_v17 = vpop.trf.xlu0 }
  0xda   : > { %227 = vst [vmem:[#allocation2 + $0x8] sm:$0xff] %v211_v17 }
  0xdd   : > { %v212_v18 = vpop.trf.xlu0 }
  0xde   : > { %228 = vst [vmem:[#allocation2 + $0x10] sm:$0xff] %v212_v18 }
  0xe1   : > { %v213_v19 = vpop.trf.xlu0 }
  0xe2   : > { %229 = vst [vmem:[#allocation2 + $0x18] sm:$0xff] %v213_v19 }
  0xe5   : > { %v214_v20 = vpop.trf.xlu0 }
  0xe6   : > { %230 = vst [vmem:[#allocation2 + $0x20] sm:$0xff] %v214_v20 }
  0xe9   : > { %v215_v21 = vpop.trf.xlu0  ;;  %v242_v9 = vld [vmem:[#allocation2] ss:$8 sm:$0xf]  ;;  %v250_v14 = vld [vmem:[#allocation2 + $0x1] ss:$8 sm:$0xf] }
  0xea   : > { %231 = vst [vmem:[#allocation2 + $0x28] sm:$0xff] %v215_v21  ;;  %v258_v15 = vld [vmem:[#allocation2 + $0x2] ss:$8 sm:$0xf] }
  0xeb   : > { %v266_v13 = vld [vmem:[#allocation2 + $0x3] ss:$8 sm:$0xf]  ;;  %v274_v63 = vld [vmem:[#allocation2 + $0x4] ss:$8 sm:$0xf] }
  0xec   : > { %v282_v11 = vld [vmem:[#allocation2 + $0x5] ss:$8 sm:$0xf]  ;;  %v298_v61 = vld [vmem:[#allocation2 + $0x7] ss:$8 sm:$0xf] }
  0xed   : > { %v216_v30 = vpop.trf.xlu0 }
  0xee   : > { %232 = vst [vmem:[#allocation2 + $0x30] sm:$0xff] %v216_v30 }
  0xf1   : > { %v217_v47 = vpop.trf.xlu0 }
  0xf2   : > { %233 = vst [vmem:[#allocation2 + $0x38] sm:$0xff] %v217_v47 }
  0xf5   : > { %v218_v0 = vpop.trf.xlu0 }
  0xf6   : > { %234 = vst [vmem:[#allocation2 + $0x40] sm:$0xff] %v218_v0 }
  0xf9   : > { %v243_v20 = vld [vmem:[#allocation2] ss:$8 sm:$0xf0]  ;;  %v251_v21 = vld [vmem:[#allocation2 + $0x1] ss:$8 sm:$0xf0]  ;;  %v219_v30 = vpop.trf.xlu0 }
  0xfa   : > { %v1637_v16 = vor.u32 %v243_v20, %v242_v9  ;;  %v1639_v19 = vor.u32 %v251_v21, %v250_v14  ;;  %v259_v18 = vld [vmem:[#allocation2 + $0x2] ss:$8 sm:$0xf0]  ;;  %v267_v17 = vld [vmem:[#allocation2 + $0x3] ss:$8 sm:$0xf0] }
  0xfb   : > { %235 = vst [vmem:[#allocation2 + $0x48] sm:$0xff] %v219_v30  ;;  %v1643_v8 = vor.u32 %v259_v18, %v258_v15  ;;  %v275_v12 = vld [vmem:[#allocation2 + $0x4] ss:$8 sm:$0xf0]  ;;  %v1656_v18 = vor.u32 %v267_v17, %v266_v13 }
  0xfc   : > { %v283_v7 = vld [vmem:[#allocation2 + $0x5] ss:$8 sm:$0xf0]  ;;  %v291_v14 = vld [vmem:[#allocation2 + $0x6] ss:$8 sm:$0xf0]  ;;  %v307_v21 = vmul.f32 %v2340_v22, %v1637_v16  ;;  %v311_v30 = vmul.f32 %v310_v23, %v1639_v19  ;;  %v1658_v62 = vor.u32 %v275_v12, %v274_v63  ;;  %v365_v9 = vmul.f32 %v364_v25, %v1637_v16 }
  0xfd   : > { %v299_v20 = vld [vmem:[#allocation2 + $0x7] ss:$8 sm:$0xf0]  ;;  %v1660_v6 = vor.u32 %v283_v7, %v282_v11  ;;  %v220_v0 = vpop.trf.xlu0  ;;  %v290_v22 = vld [vmem:[#allocation2 + $0x6] ss:$8 sm:$0xf]  ;;  %v369_v47 = vmul.f32 %v2354_v26, %v1639_v19  ;;  %v423_v13 = vmul.f32 %v2351_v28, %v1637_v16  ;;  %v427_v63 = vmul.f32 %v2355_v29, %v1639_v19 }
  0xfe   : > { %236 = vst [vmem:[#allocation2 + $0x50] sm:$0xff] %v220_v0  ;;  %v1675_v11 = vor.u32 %v291_v14, %v290_v22  ;;  %v1677_v12 = vor.u32 %v299_v20, %v298_v61  ;;  %v317_v17 = vmul.f32 %v316_v24, %v1643_v8  ;;  %v313_v15 = vadd.f32 %v311_v30, %v307_v21 }
  0xff   : > { %v375_v28 = vmul.f32 %v374_v27, %v1643_v8  ;;  %v371_v26 = vadd.f32 %v369_v47, %v365_v9  ;;  %v756_v29 = vstv %s1621_s25  ;;  %v323_v61 = vmul.f32 %v322_v31, %v1656_v18  ;;  %s2547_s25 = sld [smem:[#allocation52_spill]] }
 0x100   : > { %v319_v22 = vadd.f32 %v317_v17, %v313_v15  ;;  %v329_v14 = vmul.f32 %v328_v36, %v1658_v62  ;;  %v335_v20 = vmul.f32 %v334_v37, %v1660_v6  ;;  %v381_v9 = vmul.f32 %v380_v32, %v1656_v18 }
 0x101   : > { %v221_v7 = vpop.trf.xlu0  ;;  %v377_v47 = vadd.f32 %v375_v28, %v371_v26  ;;  %v429_v21 = vadd.f32 %v427_v63, %v423_v13  ;;  %v433_v30 = vmul.f32 %v432_v33, %v1643_v8  ;;  %v341_v17 = vmul.f32 %v340_v38, %v1675_v11 }
 0x102   : > { %237 = vst [vmem:[#allocation2 + $0x58] sm:$0xff] %v221_v7  ;;  %v325_v15 = vadd.f32 %v323_v61, %v319_v22  ;;  %v347_v0 = vmul.f32 %v2362_v39, %v1677_v12  ;;  %v387_v26 = vmul.f32 %v2363_v40, %v1658_v62  ;;  %v393_v13 = vmul.f32 %v2366_v41, %v1660_v6 }
 0x103   : > { %v383_v28 = vadd.f32 %v381_v9, %v377_v47  ;;  %v435_v63 = vadd.f32 %v433_v30, %v429_v21  ;;  %v439_v7 = vmul.f32 %v2364_v44, %v1656_v18  ;;  %v399_v39 = vmul.f32 %v2365_v42, %v1675_v11 }
 0x104   : > { %v331_v61 = vadd.f32 %v329_v14, %v325_v15  ;;  %v481_v40 = vmul.f32 %v480_v34, %v1637_v16  ;;  %v485_v47 = vmul.f32 %v484_v35, %v1639_v19  ;;  %v405_v21 = vmul.f32 %v404_v43, %v1677_v12 }
 0x105   : > { %v222_v22 = vpop.trf.xlu0  ;;  %v389_v9 = vadd.f32 %v387_v26, %v383_v28  ;;  %v441_v30 = vadd.f32 %v439_v7, %v435_v63  ;;  %v445_v14 = vmul.f32 %v444_v45, %v1658_v62  ;;  %v451_v44 = vmul.f32 %v450_v46, %v1660_v6 }
 0x106   : > { %238 = vst [vmem:[#allocation2 + $0x60] sm:$0xff] %v222_v22  ;;  %v337_v15 = vadd.f32 %v335_v20, %v331_v61  ;;  %v487_v42 = vadd.f32 %v485_v47, %v481_v40  ;;  %v491_v22 = vmul.f32 %v490_v50, %v1643_v8  ;;  %v457_v28 = vmul.f32 %v456_v48, %v1675_v11 }
 0x107   : > { %v395_v41 = vadd.f32 %v393_v13, %v389_v9  ;;  %v447_v26 = vadd.f32 %v445_v14, %v441_v30  ;;  %v539_v63 = vmul.f32 %v2386_v56, %v1637_v16  ;;  %v497_v40 = vmul.f32 %v2390_v51, %v1656_v18 }
 0x108   : > { %v343_v20 = vadd.f32 %v341_v17, %v337_v15  ;;  %v493_v61 = vadd.f32 %v491_v22, %v487_v42  ;;  %v543_v47 = vmul.f32 %v2368_v57, %v1639_v19  ;;  %v463_v30 = vmul.f32 %v462_v49, %v1677_v12 }
 0x109   : > { %v223_v7 = vpop.trf.xlu0  ;;  %v401_v13 = vadd.f32 %v399_v39, %v395_v41  ;;  %v453_v9 = vadd.f32 %v451_v44, %v447_v26  ;;  %v503_v14 = vmul.f32 %v2389_v52, %v1658_v62  ;;  %v549_v22 = vmul.f32 %v2381_v58, %v1643_v8 }
 0x10a   : > { %239 = vst [vmem:[#allocation2 + $0x68] sm:$0xff] %v223_v7  ;;  %v349_v17 = vadd.f32 %v347_v0, %v343_v20  ;;  %v499_v15 = vadd.f32 %v497_v40, %v493_v61  ;;  %v545_v42 = vadd.f32 %v543_v47, %v539_v63  ;;  %v509_v39 = vmul.f32 %v2387_v53, %v1660_v6 }
 0x10b   : > { %v407_v57 = vadd.f32 %v405_v21, %v401_v13  ;;  %v459_v7 = vadd.f32 %v457_v28, %v453_v9  ;;  %v555_v41 = vmul.f32 %v2379_v59, %v1656_v18  ;;  %v597_v20 = vmul.f32 %v2380_v2, %v1637_v16 }
 0x10c   : > { %v353_v0 = vadd.f32 %v352_v1, %v349_v17  ;;  %v505_v26 = vadd.f32 %v503_v14, %v499_v15  ;;  %v551_v63 = vadd.f32 %v549_v22, %v545_v42  ;;  %v515_v61 = vmul.f32 %v2385_v54, %v1675_v11 }
 0x10d   : > { %v224_v44 = vpop.trf.xlu0  ;;  %v411_v21 = vadd.f32 %v2391_v5, %v407_v57  ;;  %v465_v28 = vadd.f32 %v463_v30, %v459_v7  ;;  %v601_v40 = vmul.f32 %v2378_v3, %v1639_v19  ;;  %v561_v9 = vmul.f32 %v2377_v60, %v1658_v62 }
 0x10e   : > { %240 = vst [vmem:[#allocation2 + $0x70] sm:$0xff] %v224_v44  ;;  %v355_v16 = vmul.f32 0.5, %v353_v0  ;;  %v511_v47 = vadd.f32 %v509_v39, %v505_v26  ;;  %v557_v13 = vadd.f32 %v555_v41, %v551_v63  ;;  %v607_v14 = vmul.f32 %v2376_v4, %v1643_v8 }
 0x10f   : > { %v413_v57 = vmul.f32 0.5, %v411_v21  ;;  %v469_v30 = vadd.f32 %v2388_v10, %v465_v28  ;;  %v603_v19 = vadd.f32 %v601_v40, %v597_v20  ;;  %v521_v42 = vmul.f32 %v2383_v55, %v1677_v12 }
 0x110   : > { %v517_v15 = vadd.f32 %v515_v61, %v511_v47  ;;  %v563_v22 = vadd.f32 %v561_v9, %v557_v13  ;;  %v2548_v7 = vstv %s2543_s23  ;;  %1154 = vtanh.f32 %v355_v16  ;;  %s1817_s23 = sld [smem:[#allocation3 + $0x51]] }
 0x111   : > { %v225_v17 = vpop.trf.xlu0  ;;  %v567_v39 = vmul.f32 %v2548_v7, %v1660_v6  ;;  %v471_v8 = vmul.f32 0.5, %v469_v30  ;;  %v609_v41 = vadd.f32 %v607_v14, %v603_v19  ;;  %v2551_v44 = vstv %s2494_s30  ;;  %v254_v7 = vld [vmem:[#allocation2 + $0x41] ss:$8 sm:$0xf] }
 0x112   : > { %241 = vst [vmem:[#allocation2 + $0x78] sm:$0xff] %v225_v17  ;;  %v613_v0 = vmul.f32 %v2551_v44, %v1656_v18  ;;  %1156 = vtanh.f32 %v413_v57  ;;  %v523_v26 = vadd.f32 %v521_v42, %v517_v15  ;;  %v2554_v20 = vstv %s2547_s25  ;;  %v262_v44 = vld [vmem:[#allocation2 + $0x42] ss:$8 sm:$0xf]  ;;  %s2567_s25 = sld [smem:[#allocation21_spill]] }
 0x113   : > { %v569_v63 = vadd.f32 %v567_v39, %v563_v22  ;;  %v573_v21 = vmul.f32 %v2554_v20, %v1675_v11  ;;  %1158 = vtanh.f32 %v471_v8  ;;  %v2555_v61 = vstv %s1529_s26  ;;  %v246_v22 = vld [vmem:[#allocation2 + $0x40] ss:$8 sm:$0xf]  ;;  %s2566_s26 = sld [smem:[#allocation20_spill]] }
 0x114   : > { %v615_v28 = vadd.f32 %v613_v0, %v609_v41  ;;  %v619_v40 = vmul.f32 %v2555_v61, %v1658_v62  ;;  %v768_v16 = vstv %s1765_s28  ;;  %v2556_v47 = vstv %s1551_s20  ;;  %v270_v0 = vld [vmem:[#allocation2 + $0x43] ss:$8 sm:$0xf] }
 0x115   : > { %v527_v18 = vadd.f32 %v2556_v47, %v523_v26  ;;  %v575_v13 = vadd.f32 %v573_v21, %v569_v63  ;;  %v2557_v9 = vstv %s2550_s13  ;;  %v774_v30 = vstv %s1774_s24  ;;  %s2559_s13 = sld [smem:[#allocation64_spill]] }
 0x116   : > { %2553 = sst [smem:[#allocation24_spill]] %s1817_s23  ;;  %v579_v57 = vmul.f32 %v2557_v9, %v1677_v12  ;;  %v621_v19 = vadd.f32 %v619_v40, %v615_v28  ;;  %v2558_v14 = vstv %s2552_s27  ;;  %v792_v42 = vstv %s1784_s16  ;;  %v286_v28 = vld [vmem:[#allocation2 + $0x45] ss:$8 sm:$0xf]  ;;  %s2578_s27 = sld [smem:[#allocation68_spill]] }
 0x117   : > { %v625_v17 = vmul.f32 %v2558_v14, %v1660_v6  ;;  %v529_v62 = vmul.f32 0.5, %v527_v18  ;;  %v796_v8 = vstv %s1786_s1  ;;  %v802_v41 = vstv %s1791_s12  ;;  %v278_v6 = vld [vmem:[#allocation2 + $0x44] ss:$8 sm:$0xf]  ;;  %s2613_s12 = sld [smem:[#allocation76_spill]]  ;;  %s2695_s1 = sld [smem:[#allocation14_spill]] }
 0x118   : > { %v581_v39 = vadd.f32 %v579_v57, %v575_v13  ;;  %v808_v20 = vstv %s1793_s11  ;;  %v814_v21 = vstv %s1802_s6  ;;  %v2560_v47 = vstv %s1537_s0  ;;  %v294_v57 = vld [vmem:[#allocation2 + $0x46] ss:$8 sm:$0xf]  ;;  %v302_v14 = vld [vmem:[#allocation2 + $0x47] ss:$8 sm:$0xf] }
 0x119   : > { %v627_v26 = vadd.f32 %v625_v17, %v621_v19  ;;  %v247_v61 = vld [vmem:[#allocation2 + $0x40] ss:$8 sm:$0xf0]  ;;  %v255_v40 = vld [vmem:[#allocation2 + $0x41] ss:$8 sm:$0xf0]  ;;  %1160 = vtanh.f32 %v529_v62  ;;  %v631_v18 = vmul.f32 %v2560_v47, %v1675_v11  ;;  %v820_v9 = vstv %s1812_s21 }
 0x11a   : > { %v1847_v4 = vor.u32 %v247_v61, %v246_v22  ;;  %v1849_v19 = vor.u32 %v255_v40, %v254_v7  ;;  %v263_v17 = vld [vmem:[#allocation2 + $0x42] ss:$8 sm:$0xf0]  ;;  %v271_v60 = vld [vmem:[#allocation2 + $0x43] ss:$8 sm:$0xf0]  ;;  %v2562_v22 = vstv %s2499_s7  ;;  %v1155_v40 = vpop.eup %1154  ;;  %v2592_v52 = vstv %s2579_s3 }
 0x11b   : > { %v2561_v3 = vstv %s2559_s13  ;;  %v1855_v2 = vor.u32 %v263_v17, %v262_v44  ;;  %v1857_v11 = vor.u32 %v271_v60, %v270_v0  ;;  %v279_v47 = vld [vmem:[#allocation2 + $0x44] ss:$8 sm:$0xf0]  ;;  %v287_v58 = vld [vmem:[#allocation2 + $0x45] ss:$8 sm:$0xf0]  ;;  %v585_v61 = vadd.f32 %v2562_v22, %v581_v39 }
 0x11c   : > { %v637_v59 = vmul.f32 %v2561_v3, %v1677_v12  ;;  %v633_v7 = vadd.f32 %v631_v18, %v627_v26  ;;  %s2563_s0 = sld [smem:[#allocation18_spill]]  ;;  %v1861_v55 = vor.u32 %v279_v47, %v278_v6  ;;  %v1863_v3 = vor.u32 %v287_v58, %v286_v28  ;;  %v295_v12 = vld [vmem:[#allocation2 + $0x46] ss:$8 sm:$0xf0]  ;;  %v1157_v26 = vpop.eup %1156  ;;  %s2575_s13 = sld [smem:[#allocation67_spill]] }
 0x11d   : > { %v303_v60 = vld [vmem:[#allocation2 + $0x47] ss:$8 sm:$0xf0]  ;;  %v2568_v44 = vstv %s2507_s18  ;;  %v312_v39 = vmul.f32 %v310_v23, %v1849_v19  ;;  %v1871_v18 = vor.u32 %v295_v12, %v294_v57  ;;  %v318_v58 = vmul.f32 %v316_v24, %v1855_v2  ;;  %v1159_v17 = vpop.eup %1158  ;;  %s2590_s18 = sld [smem:[#allocation80_spill]]  ;;  %s2620_s11 = sld [smem:[#allocation59_spill]] }
 0x11e   : > { %v308_v0 = vmul.f32 %v2568_v44, %v1847_v4  ;;  %v1873_v6 = vor.u32 %v303_v60, %v302_v14  ;;  %v324_v28 = vmul.f32 %v322_v31, %v1857_v11  ;;  %v366_v22 = vmul.f32 %v364_v25, %v1847_v4 }
 0x11f   : > { %v376_v57 = vmul.f32 %v374_v27, %v1855_v2  ;;  %v1893_v14 = vmul.f32 %v380_v32, %v1857_v11  ;;  %v2572_v24 = vstv %s2566_s26  ;;  %v2573_v12 = vstv %s2567_s25  ;;  %s2577_s25 = sld [smem:[#allocation78_spill]] }
 0x120   : > { %v314_v47 = vadd.f32 %v312_v39, %v308_v0  ;;  %v1898_v31 = vmul.f32 %v2572_v24, %v1847_v4  ;;  %v1903_v60 = vmul.f32 %v2573_v12, %v1849_v19  ;;  %v1908_v25 = vmul.f32 %v432_v33, %v1855_v2  ;;  %s2586_s26 = sld [smem:[#allocation70_spill]] }
 0x121   : > { %v1913_v27 = vmul.f32 %v480_v34, %v1847_v4  ;;  %v1918_v32 = vmul.f32 %v484_v35, %v1849_v19  ;;  %v359_v39 = vmul.f32 0.5, %v1155_v40  ;;  %v475_v24 = vmul.f32 0.5, %v1159_v17 }
 0x122   : > { %v2569_v23 = vstv %s2563_s0  ;;  %s2574_s0 = sld [smem:[#allocation66_spill]]  ;;  %v587_v12 = vmul.f32 0.5, %v585_v61  ;;  %v639_v33 = vadd.f32 %v637_v59, %v633_v7  ;;  %v330_v34 = vmul.f32 %v328_v36, %v1861_v55 }
 0x123   : > { %v370_v44 = vmul.f32 %v2569_v23, %v1849_v19  ;;  %v417_v23 = vmul.f32 0.5, %v1157_v26  ;;  %v336_v35 = vmul.f32 %v334_v37, %v1863_v3  ;;  %v1161_v40 = vpop.eup %1160  ;;  %v477_v54 = vadd.f32 0.5, %v475_v24 }
 0x124   : > { %1162 = vtanh.f32 %v587_v12  ;;  %v533_v59 = vmul.f32 0.5, %v1161_v40  ;;  %v2585_v7 = vstv %s2575_s13  ;;  %v2591_v53 = vstv %s2578_s27 }
 0x125   : > { %v372_v0 = vadd.f32 %v370_v44, %v366_v22  ;;  %v361_v22 = vadd.f32 0.5, %v359_v39  ;;  %v320_v44 = vadd.f32 %v318_v58, %v314_v47  ;;  %v419_v26 = vadd.f32 0.5, %v417_v23 }
 0x126   : > { %v2587_v47 = vstv %s2576_s22  ;;  %v2589_v39 = vstv %s2577_s25  ;;  %v665_v23 = vmul.f32 %v2592_v52, %v477_v54  ;;  %v2593_v24 = vstv %s2580_s4  ;;  %s2629_s25 = sld [smem:[#allocation43_spill]] }
 0x127   : > { %v655_v58 = vmul.f32 %v2585_v7, %v361_v22  ;;  %v701_v36 = vmul.f32 %v2587_v47, %v361_v22  ;;  %v747_v56 = vmul.f32 %v2589_v39, %v361_v22  ;;  %v659_v10 = vmul.f32 %v2591_v53, %v419_v26 }
 0x128   : > { %v2584_v61 = vstv %s2574_s0  ;;  %v705_v12 = vmul.f32 %v2593_v24, %v419_v26  ;;  %v2594_v40 = vstv %s2581_s10  ;;  %v2595_v62 = vstv %s2582_s5  ;;  %s2617_s10 = sld [smem:[#allocation72_spill]] }
 0x129   : > { %v643_v17 = vadd.f32 %v2584_v61, %v639_v33  ;;  %v535_v33 = vadd.f32 0.5, %v533_v59  ;;  %v711_v61 = vmul.f32 %v2594_v40, %v477_v54  ;;  %v751_v7 = vmul.f32 %v2595_v62, %v419_v26 }
 0x12a   : > { %v757_v47 = vmul.f32 %v756_v29, %v477_v54  ;;  %v661_v39 = vadd.f32 %v659_v10, %v655_v58  ;;  %v793_v53 = vmul.f32 %v792_v42, %v361_v22  ;;  %v2597_v13 = vstv %s2586_s26  ;;  %s2622_s26 = sld [smem:[#allocation41_spill]] }
 0x12b   : > { %v645_v37 = vmul.f32 0.5, %v643_v17  ;;  %v707_v17 = vadd.f32 %v705_v12, %v701_v36  ;;  %v671_v52 = vmul.f32 %v2597_v13, %v535_v33  ;;  %v2598_v63 = vstv %s2588_s2  ;;  %s2624_s2 = sld [smem:[#allocation42_spill]] }
 0x12c   : > { %v717_v24 = vmul.f32 %v2598_v63, %v535_v33  ;;  %v753_v15 = vadd.f32 %v751_v7, %v747_v56  ;;  %v2599_v59 = vstv %s2590_s18  ;;  %v667_v40 = vadd.f32 %v665_v23, %v661_v39  ;;  %s2603_s18 = sld [smem:[#allocation35_spill]] }
 0x12d   : > { %1164 = vtanh.f32 %v645_v37  ;;  %v763_v51 = vmul.f32 %v2599_v59, %v535_v33  ;;  %v713_v5 = vadd.f32 %v711_v61, %v707_v17  ;;  %v797_v62 = vmul.f32 %v796_v8, %v419_v26 }
 0x12e   : > { %v803_v37 = vmul.f32 %v802_v41, %v477_v54  ;;  %v759_v10 = vadd.f32 %v757_v47, %v753_v15  ;;  %v809_v22 = vmul.f32 %v808_v20, %v535_v33  ;;  %v326_v58 = vadd.f32 %v324_v28, %v320_v44  ;;  %v1163_v33 = vpop.eup %1162 }
 0x12f   : > { %v342_v63 = vmul.f32 %v340_v38, %v1871_v18  ;;  %v673_v56 = vadd.f32 %v671_v52, %v667_v40  ;;  %v719_v13 = vadd.f32 %v717_v24, %v713_v5  ;;  %v799_v36 = vadd.f32 %v797_v62, %v793_v53 }
 0x130   : > { %v2602_v23 = vstv %s2521_s19  ;;  %v765_v26 = vadd.f32 %v763_v51, %v759_v10  ;;  %v332_v54 = vadd.f32 %v330_v34, %v326_v58  ;;  %v378_v61 = vadd.f32 %v376_v57, %v372_v0  ;;  %s2632_s19 = sld [smem:[#allocation46_spill]] }
 0x131   : > { %v348_v12 = vmul.f32 %v2602_v23, %v1873_v6  ;;  %v2606_v15 = vstv %s2522_s9  ;;  %v805_v28 = vadd.f32 %v803_v37, %v799_v36  ;;  %v2607_v44 = vstv %s2600_s15  ;;  %s2612_s9 = sld [smem:[#allocation71_spill]]  ;;  %s2619_s15 = sld [smem:[#allocation77_spill]] }
 0x132   : > { %v388_v7 = vmul.f32 %v2606_v15, %v1861_v55  ;;  %v394_v38 = vmul.f32 %v2607_v44, %v1863_v3  ;;  %v2608_v5 = vstv %s2525_s17  ;;  %v406_v39 = vmul.f32 %v404_v43, %v1873_v6  ;;  %s2634_s17 = sld [smem:[#allocation44_spill]] }
 0x133   : > { %v400_v47 = vmul.f32 %v2608_v5, %v1871_v18  ;;  %v591_v51 = vmul.f32 0.5, %v1163_v33  ;;  %v338_v34 = vadd.f32 %v336_v35, %v332_v54  ;;  %v384_v57 = vadd.f32 %v1893_v14, %v378_v61 }
 0x134   : > { %v430_v0 = vadd.f32 %v1903_v60, %v1898_v31  ;;  %v811_v17 = vadd.f32 %v809_v22, %v805_v28  ;;  %v2614_v53 = vstv %s2603_s18  ;;  %v446_v24 = vmul.f32 %v444_v45, %v1861_v55  ;;  %s2626_s18 = sld [smem:[#allocation63_spill]] }
 0x135   : > { %v440_v52 = vmul.f32 %v2614_v53, %v1857_v11  ;;  %v452_v43 = vmul.f32 %v450_v46, %v1863_v3  ;;  %v593_v35 = vadd.f32 0.5, %v591_v51  ;;  %v344_v59 = vadd.f32 %v342_v63, %v338_v34 }
 0x136   : > { %v390_v14 = vadd.f32 %v388_v7, %v384_v57  ;;  %v436_v40 = vadd.f32 %v1908_v25, %v430_v0  ;;  %v458_v31 = vmul.f32 %v456_v48, %v1871_v18  ;;  %v464_v60 = vmul.f32 %v462_v49, %v1873_v6 }
 0x137   : > { %v1165_v62 = vpop.eup %1164  ;;  %v488_v37 = vadd.f32 %v1918_v32, %v1913_v27  ;;  %v492_v45 = vmul.f32 %v490_v50, %v1855_v2  ;;  %v2616_v10 = vstv %s2612_s9  ;;  %v2618_v58 = vstv %s2613_s12 }
 0x138   : > { %v649_v46 = vmul.f32 0.5, %v1165_v62  ;;  %v677_v22 = vmul.f32 %v2616_v10, %v593_v35  ;;  %v723_v25 = vmul.f32 %v2618_v58, %v593_v35  ;;  %v769_v48 = vmul.f32 %v768_v16, %v593_v35 }
 0x139   : > { %v815_v49 = vmul.f32 %v814_v21, %v593_v35  ;;  %v350_v63 = vadd.f32 %v348_v12, %v344_v59  ;;  %v396_v36 = vadd.f32 %v394_v38, %v390_v14  ;;  %v442_v23 = vadd.f32 %v440_v52, %v436_v40 }
 0x13a   : > { %v651_v27 = vadd.f32 0.5, %v649_v46  ;;  %v679_v32 = vadd.f32 %v677_v22, %v673_v56  ;;  %v725_v54 = vadd.f32 %v723_v25, %v719_v13  ;;  %v771_v50 = vadd.f32 %v769_v48, %v765_v26 }
 0x13b   : > { %v817_v61 = vadd.f32 %v815_v49, %v811_v17  ;;  %v354_v15 = vadd.f32 %v352_v1, %v350_v63  ;;  %v402_v7 = vadd.f32 %v400_v47, %v396_v36  ;;  %v448_v33 = vadd.f32 %v446_v24, %v442_v23 }
 0x13c   : > { %v2621_v28 = vstv %s2617_s10  ;;  %v2623_v5 = vstv %s2619_s15  ;;  %v775_v12 = vmul.f32 %v774_v30, %v651_v27  ;;  %v821_v56 = vmul.f32 %v820_v9, %v651_v27 }
 0x13d   : > { %v683_v44 = vmul.f32 %v2621_v28, %v651_v27  ;;  %v729_v51 = vmul.f32 %v2623_v5, %v651_v27  ;;  %v356_v13 = vmul.f32 0.5, %v354_v15  ;;  %v408_v26 = vadd.f32 %v406_v39, %v402_v7 }
 0x13e   : > { %v454_v38 = vadd.f32 %v452_v43, %v448_v33  ;;  %v494_v1 = vadd.f32 %v492_v45, %v488_v37  ;;  %v777_v57 = vadd.f32 %v775_v12, %v771_v50  ;;  %v823_v0 = vadd.f32 %v821_v56, %v817_v61 }
 0x13f   : > { %v685_v47 = vadd.f32 %v683_v44, %v679_v32  ;;  %v731_v34 = vadd.f32 %v729_v51, %v725_v54  ;;  %1166 = vtanh.f32 %v356_v13  ;;  %v2625_v17 = vstv %s2620_s11  ;;  %s2635_s11 = sld [smem:[#allocation47_spill]] }
 0x140   : > { %v412_v53 = vadd.f32 %v2625_v17, %v408_v26  ;;  %v460_v52 = vadd.f32 %v458_v31, %v454_v38  ;;  %v2627_v24 = vstv %s2622_s26  ;;  %v2628_v59 = vstv %s1772_s8  ;;  %s2637_s26 = sld [smem:[#allocation45_spill]]  ;;  %s2050_s8 = sld [smem:[#allocation3 + $0x52]] }
 0x141   : > { %v498_v35 = vmul.f32 %v2627_v24, %v1857_v11  ;;  %v689_v14 = vadd.f32 %v2628_v59, %v685_v47  ;;  %v2630_v40 = vstv %s1800_s29  ;;  %v2631_v43 = vstv %s1810_s14  ;;  %s2639_s14 = sld [smem:[#allocation48_spill]]  ;;  %s2647_s29 = sld [smem:[#allocation50_spill]] }
 0x142   : > { %v735_v39 = vadd.f32 %v2630_v40, %v731_v34  ;;  %v781_v62 = vadd.f32 %v2631_v43, %v777_v57  ;;  %v2633_v37 = vstv %s1817_s23  ;;  %v414_v46 = vmul.f32 0.5, %v412_v53  ;;  %s2641_s23 = sld [smem:[#allocation54_spill]] }
 0x143   : > { %v827_v45 = vadd.f32 %v2633_v37, %v823_v0  ;;  %v466_v10 = vadd.f32 %v464_v60, %v460_v52  ;;  %v500_v22 = vadd.f32 %v498_v35, %v494_v1  ;;  %v2636_v31 = vstv %s2624_s2  ;;  %s2644_s2 = sld [smem:[#allocation49_spill]] }
 0x144   : > { %v504_v58 = vmul.f32 %v2636_v31, %v1861_v55  ;;  %v691_v25 = vmul.f32 0.5, %v689_v14  ;;  %v737_v48 = vmul.f32 0.5, %v735_v39  ;;  %v783_v49 = vmul.f32 0.5, %v781_v62 }
 0x145   : > { %v829_v63 = vmul.f32 0.5, %v827_v45  ;;  %1168 = vtanh.f32 %v414_v46  ;;  %v2638_v36 = vstv %s2626_s18  ;;  %v2640_v32 = vstv %s2629_s25  ;;  %s2646_s18 = sld [smem:[#allocation56_spill]]  ;;  %s2649_s25 = sld [smem:[#allocation57_spill]] }
 0x146   : > { %v470_v23 = vadd.f32 %v2638_v36, %v466_v10  ;;  %v506_v27 = vadd.f32 %v504_v58, %v500_v22  ;;  %v510_v54 = vmul.f32 %v2640_v32, %v1863_v3  ;;  %1170 = vtanh.f32 %v691_v25 }
 0x147   : > { %v2642_v60 = vstv %s2632_s19  ;;  %1172 = vtanh.f32 %v737_v48  ;;  %v2643_v15 = vstv %s2634_s17  ;;  %v2645_v33 = vstv %s2635_s11  ;;  %s2651_s19 = sld [smem:[#allocation51_spill]]  ;;  %s2058_s17 = sld [smem:[#allocation3 + $0x53]] }
 0x148   : > { %v540_v50 = vmul.f32 %v2642_v60, %v1847_v4  ;;  %v512_v61 = vadd.f32 %v510_v54, %v506_v27  ;;  %v516_v7 = vmul.f32 %v2643_v15, %v1871_v18  ;;  %v544_v28 = vmul.f32 %v2645_v33, %v1849_v19  ;;  %s2657_s11 = sld [smem:[#allocation60_spill]] }
 0x149   : > { %1174 = vtanh.f32 %v783_v49  ;;  %v472_v44 = vmul.f32 0.5, %v470_v23  ;;  %v2648_v5 = vstv %s2637_s26  ;;  %v2650_v13 = vstv %s2639_s14  ;;  %v1167_v47 = vpop.eup %1166  ;;  %s2656_s14 = sld [smem:[#allocation52_spill]]  ;;  %s2072_s26 = sld [smem:[#allocation3 + $0x54]] }
 0x14a   : > { %v522_v51 = vmul.f32 %v2648_v5, %v1873_v6  ;;  %1176 = vtanh.f32 %v829_v63  ;;  %v518_v12 = vadd.f32 %v516_v7, %v512_v61  ;;  %v546_v56 = vadd.f32 %v544_v28, %v540_v50 }
 0x14b   : > { %v550_v26 = vmul.f32 %v2650_v13, %v1855_v2  ;;  %v2652_v38 = vstv %s2641_s23  ;;  %v2653_v0 = vstv %s2644_s2  ;;  %v2654_v53 = vstv %s2646_s18  ;;  %s2082_s23 = sld [smem:[#allocation3 + $0x55]]  ;;  %s2098_s2 = sld [smem:[#allocation3 + $0x56]] }
 0x14c   : > { %v598_v1 = vmul.f32 %v2652_v38, %v1847_v4  ;;  %v524_v34 = vadd.f32 %v522_v51, %v518_v12  ;;  %v556_v17 = vmul.f32 %v2653_v0, %v1857_v11  ;;  %v602_v52 = vmul.f32 %v2654_v53, %v1849_v19  ;;  %s2668_s18 = sld [smem:[#allocation64_spill]] }
 0x14d   : > { %v552_v57 = vadd.f32 %v550_v26, %v546_v56  ;;  %1178 = vtanh.f32 %v472_v44  ;;  %v2655_v24 = vstv %s2647_s29  ;;  %v2658_v4 = vstv %s1551_s20  ;;  %s2661_s29 = sld [smem:[#allocation53_spill]] }
 0x14e   : > { %v562_v35 = vmul.f32 %v2655_v24, %v1861_v55  ;;  %v528_v59 = vadd.f32 %v2658_v4, %v524_v34  ;;  %v604_v40 = vadd.f32 %v602_v52, %v598_v1  ;;  %v2659_v39 = vstv %s2649_s25  ;;  %s2665_s20 = sld [smem:[#allocation61_spill]]  ;;  %s2673_s25 = sld [smem:[#allocation78_spill]] }
 0x14f   : > { %v558_v14 = vadd.f32 %v556_v17, %v552_v57  ;;  %v608_v43 = vmul.f32 %v2659_v39, %v1855_v2  ;;  %v2660_v62 = vstv %s2651_s19  ;;  %v1169_v19 = vpop.eup %1168  ;;  %v2662_v22 = vstv %s2494_s30  ;;  %s2667_s30 = sld [smem:[#allocation62_spill]] }
 0x150   : > { %v568_v37 = vmul.f32 %v2660_v62, %v1863_v3  ;;  %v530_v45 = vmul.f32 0.5, %v528_v59  ;;  %v614_v31 = vmul.f32 %v2662_v22, %v1857_v11  ;;  %v1171_v58 = vpop.eup %1170  ;;  %v838_v25 = vstv %s2050_s8 }
 0x151   : > { %v564_v46 = vadd.f32 %v562_v35, %v558_v14  ;;  %v610_v10 = vadd.f32 %v608_v43, %v604_v40  ;;  %v2663_v48 = vstv %s2656_s14  ;;  %v2664_v2 = vstv %s2657_s11  ;;  %v1173_v36 = vpop.eup %1172 }
 0x152   : > { %v574_v49 = vmul.f32 %v2663_v48, %v1871_v18  ;;  %v620_v63 = vmul.f32 %v2664_v2, %v1861_v55  ;;  %v695_v23 = vmul.f32 0.5, %v1171_v58  ;;  %1180 = vtanh.f32 %v530_v45 }
 0x153   : > { %v570_v27 = vadd.f32 %v568_v37, %v564_v46  ;;  %v616_v32 = vadd.f32 %v614_v31, %v610_v10  ;;  %v1175_v54 = vpop.eup %1174  ;;  %v741_v60 = vmul.f32 0.5, %v1173_v36  ;;  %v842_v50 = vstv %s2058_s17 }
 0x154   : > { %v360_v11 = vmul.f32 0.5, %v1167_v47  ;;  %v2666_v61 = vstv %s2661_s29  ;;  %v1177_v7 = vpop.eup %1176  ;;  %v697_v33 = vadd.f32 0.5, %v695_v23  ;;  %v787_v28 = vmul.f32 0.5, %v1175_v54 }
 0x155   : > { %v580_v15 = vmul.f32 %v2666_v61, %v1873_v6  ;;  %v576_v55 = vadd.f32 %v574_v49, %v570_v27  ;;  %v622_v44 = vadd.f32 %v620_v63, %v616_v32  ;;  %v743_v5 = vadd.f32 0.5, %v741_v60 }
 0x156   : > { %v833_v51 = vmul.f32 0.5, %v1177_v7  ;;  %v418_v12 = vmul.f32 0.5, %v1169_v19  ;;  %v2669_v56 = vstv %s2665_s20  ;;  %v789_v26 = vadd.f32 0.5, %v787_v28 }
 0x157   : > { %v626_v13 = vmul.f32 %v2669_v56, %v1863_v3  ;;  %v839_v38 = vmul.f32 %v838_v25, %v697_v33  ;;  %v848_v1 = vstv %s2072_s26  ;;  %v582_v47 = vadd.f32 %v580_v15, %v576_v55  ;;  %v1179_v34 = vpop.eup %1178 }
 0x158   : > { %v835_v57 = vadd.f32 0.5, %v833_v51  ;;  %v843_v0 = vmul.f32 %v842_v50, %v743_v5  ;;  %v2670_v53 = vstv %s2667_s30  ;;  %v854_v24 = vstv %s2082_s23 }
 0x159   : > { %v628_v17 = vadd.f32 %v626_v13, %v622_v44  ;;  %v632_v52 = vmul.f32 %v2670_v53, %v1871_v18  ;;  %v362_v35 = vadd.f32 0.5, %v360_v11  ;;  %v2671_v4 = vstv %s2499_s7  ;;  %s2681_s7 = sld [smem:[#allocation75_spill]] }
 0x15a   : > { %v586_v3 = vadd.f32 %v2671_v4, %v582_v47  ;;  %v2672_v59 = vstv %s2668_s18  ;;  %v845_v40 = vadd.f32 %v843_v0, %v839_v38  ;;  %v849_v39 = vmul.f32 %v848_v1, %v789_v26 }
 0x15b   : > { %v638_v14 = vmul.f32 %v2672_v59, %v1873_v6  ;;  %v420_v43 = vadd.f32 0.5, %v418_v12  ;;  %v634_v62 = vadd.f32 %v632_v52, %v628_v17  ;;  %v476_v37 = vmul.f32 0.5, %v1179_v34 }
 0x15c   : > { %v588_v18 = vmul.f32 0.5, %v586_v3  ;;  %v851_v19 = vadd.f32 %v849_v39, %v845_v40  ;;  %v855_v45 = vmul.f32 %v854_v24, %v835_v57  ;;  %v1181_v10 = vpop.eup %1180  ;;  %v860_v6 = vstv %s2098_s2 }
 0x15d   : > { %v640_v46 = vadd.f32 %v638_v14, %v634_v62  ;;  %v2674_v22 = vstv %s2575_s13  ;;  %v2675_v58 = vstv %s2576_s22  ;;  %v2676_v2 = vstv %s2574_s0  ;;  %s2684_s0 = sld [smem:[#allocation70_spill]]  ;;  %s2685_s22 = sld [smem:[#allocation58_spill]] }
 0x15e   : > { %1182 = vtanh.f32 %v588_v18  ;;  %v656_v31 = vmul.f32 %v2674_v22, %v362_v35  ;;  %v702_v48 = vmul.f32 %v2675_v58, %v362_v35  ;;  %v857_v49 = vadd.f32 %v855_v45, %v851_v19 }
 0x15f   : > { %v644_v63 = vadd.f32 %v2676_v2, %v640_v46  ;;  %v2677_v36 = vstv %s2578_s27  ;;  %v2678_v27 = vstv %s2673_s25  ;;  %v478_v54 = vadd.f32 0.5, %v476_v37  ;;  %s2686_s27 = sld [smem:[#allocation80_spill]] }
 0x160   : > { %v660_v23 = vmul.f32 %v2677_v36, %v420_v43  ;;  %v748_v32 = vmul.f32 %v2678_v27, %v362_v35  ;;  %v2679_v60 = vstv %s2580_s4  ;;  %v2680_v61 = vstv %s2582_s5  ;;  %s2697_s4 = sld [smem:[#allocation22_spill]]  ;;  %s2698_s5 = sld [smem:[#allocation24_spill]] }
 0x161   : > { %v706_v11 = vmul.f32 %v2679_v60, %v420_v43  ;;  %v752_v15 = vmul.f32 %v2680_v61, %v420_v43  ;;  %v794_v7 = vmul.f32 %v792_v42, %v362_v35  ;;  %v861_v33 = vadd.f32 %v860_v6, %v857_v49 }
 0x162   : > { %v534_v28 = vmul.f32 0.5, %v1181_v10  ;;  %v646_v55 = vmul.f32 0.5, %v644_v63  ;;  %v798_v44 = vmul.f32 %v796_v8, %v420_v43  ;;  %v662_v51 = vadd.f32 %v660_v23, %v656_v31 }
 0x163   : > { %v863_v5 = vmul.f32 0.5, %v861_v33  ;;  %v708_v12 = vadd.f32 %v706_v11, %v702_v48  ;;  %v754_v56 = vadd.f32 %v752_v15, %v748_v32  ;;  %v2687_v26 = vstv %s2579_s3  ;;  %s2696_s3 = sld [smem:[#allocation16_spill]] }
 0x164   : > { %1184 = vtanh.f32 %v646_v55  ;;  %v536_v13 = vadd.f32 0.5, %v534_v28  ;;  %v666_v38 = vmul.f32 %v2687_v26, %v478_v54  ;;  %v800_v42 = vadd.f32 %v798_v44, %v794_v7 }
 0x165   : > { %1186 = vtanh.f32 %v863_v5  ;;  %v2689_v47 = vstv %s2681_s7  ;;  %v758_v57 = vmul.f32 %v756_v29, %v478_v54  ;;  %v804_v8 = vmul.f32 %v802_v41, %v478_v54 }
 0x166   : > { %v712_v34 = vmul.f32 %v2689_v47, %v478_v54  ;;  %v668_v0 = vadd.f32 %v666_v38, %v662_v51  ;;  %v2690_v4 = vstv %s2684_s0  ;;  %v2691_v14 = vstv %s2685_s22 }
 0x167   : > { %v760_v52 = vadd.f32 %v758_v57, %v754_v56  ;;  %v672_v3 = vmul.f32 %v2690_v4, %v536_v13  ;;  %v806_v59 = vadd.f32 %v804_v8, %v800_v42  ;;  %v718_v40 = vmul.f32 %v2691_v14, %v536_v13 }
 0x168   : > { %v1183_v17 = vpop.eup %1182  ;;  %v714_v53 = vadd.f32 %v712_v34, %v708_v12  ;;  %v2692_v39 = vstv %s2686_s27  ;;  %v810_v37 = vmul.f32 %v808_v20, %v536_v13  ;;  %v2693_v45 = vstv %s2612_s9  ;;  %s2707_s9 = sld [smem:[#allocation83_spill]] }
 0x169   : > { %v592_v35 = vmul.f32 0.5, %v1183_v17  ;;  %v764_v43 = vmul.f32 %v2692_v39, %v536_v13  ;;  %v674_v29 = vadd.f32 %v672_v3, %v668_v0  ;;  %v2694_v31 = vstv %s2613_s12  ;;  %s2705_s12 = sld [smem:[#allocation11_spill]] }
 0x16a   : > { %v720_v18 = vadd.f32 %v718_v40, %v714_v53  ;;  %v812_v10 = vadd.f32 %v810_v37, %v806_v59  ;;  %v2699_v60 = vstv %s2617_s10  ;;  %v2700_v61 = vstv %s2619_s15 }
 0x16b   : > { %v594_v62 = vadd.f32 0.5, %v592_v35  ;;  %v766_v41 = vadd.f32 %v764_v43, %v760_v52  ;;  %v2701_v44 = vstv %s2695_s1  ;;  %v2702_v51 = vstv %s2696_s3 }
 0x16c   : > { %v2703_v56 = vstv %s2697_s4  ;;  %v2704_v26 = vstv %s2698_s5 }
 0x16d   : > { %v678_v46 = vmul.f32 %v2693_v45, %v594_v62  ;;  %v724_v58 = vmul.f32 %v2694_v31, %v594_v62  ;;  %v770_v48 = vmul.f32 %v768_v16, %v594_v62  ;;  %v816_v63 = vmul.f32 %v814_v21, %v594_v62 }
 0x16e   : > { %v1185_v19 = vpop.eup %1184 }
 0x16f   : > { %v650_v22 = vmul.f32 0.5, %v1185_v19  ;;  %v1187_v49 = vpop.eup %1186  ;;  %v680_v2 = vadd.f32 %v678_v46, %v674_v29  ;;  %v726_v23 = vadd.f32 %v724_v58, %v720_v18  ;;  %v772_v27 = vadd.f32 %v770_v48, %v766_v41  ;;  %s2706_s24 = sadd.s32 4294967295, %s2705_s12  }
 0x170   : > { %v867_v20 = vmul.f32 0.5, %v1187_v49  ;;  %v818_v32 = vadd.f32 %v816_v63, %v812_v10  ;;  %s1010_s28 = sshll.u32 %s2706_s24, 4 }
 0x171   : > { %v652_v36 = vadd.f32 0.5, %v650_v22  ;;  %p173_p8 = scmp.lt.s32.totalorder %s1010_s28, 31 }
 0x172   : > { %v869_v54 = vadd.f32 0.5, %v867_v20 }
 0x173   : > { %v684_v11 = vmul.f32 %v2699_v60, %v652_v36  ;;  %v730_v15 = vmul.f32 %v2700_v61, %v652_v36  ;;  %v776_v16 = vmul.f32 %v774_v30, %v652_v36  ;;  %v822_v7 = vmul.f32 %v820_v9, %v652_v36  ;;  %s2713_s28 = smov (!%p173_p8, %s1010_s28), 31 }
 0x174   : > { %871 = vxpose.xlu1.b32.start [1/2] (short) %v869_v54, 128  ;;  %s1011_s21 = sshll.u32 %s2713_s28, 3 }
 0x175   : > { %v686_v21 = vadd.f32 %v684_v11, %v680_v2  ;;  %v732_v33 = vadd.f32 %v730_v15, %v726_v23  ;;  %v778_v28 = vadd.f32 %v776_v16, %v772_v27  ;;  %v824_v55 = vadd.f32 %v822_v7, %v818_v32  ;;  %s2197_s10 = scalar_lea.vmem %s2707_s9, %s1011_s21 }
 0x177   : > { %v690_v5 = vadd.f32 %v2701_v44, %v686_v21  ;;  %v736_v12 = vadd.f32 %v2702_v51, %v732_v33  ;;  %v782_v13 = vadd.f32 %v2703_v56, %v778_v28  ;;  %v828_v38 = vadd.f32 %v2704_v26, %v824_v55 }
 0x179   : > { %v692_v42 = vmul.f32 0.5, %v690_v5  ;;  %v738_v47 = vmul.f32 0.5, %v736_v12  ;;  %v784_v34 = vmul.f32 0.5, %v782_v13  ;;  %v830_v57 = vmul.f32 0.5, %v828_v38 }
 0x17b   : > { %1188 = vtanh.f32 %v692_v42 }
 0x17c   : > { %1190 = vtanh.f32 %v738_v47 }
 0x17d   : > { %1192 = vtanh.f32 %v784_v34 }
 0x17e   : > { %1194 = vtanh.f32 %v830_v57 }
 0x185   : > { %v1189_v30 = vpop.eup %1188 }
 0x186   : > { %v1191_v9 = vpop.eup %1190  ;;  %v696_v0 = vmul.f32 0.5, %v1189_v30 }
 0x187   : > { %v1193_v8 = vpop.eup %1192  ;;  %v742_v17 = vmul.f32 0.5, %v1191_v9 }
 0x188   : > { %v1195_v53 = vpop.eup %1194  ;;  %v698_v52 = vadd.f32 0.5, %v696_v0  ;;  %v788_v35 = vmul.f32 0.5, %v1193_v8 }
 0x189   : > { %v744_v4 = vadd.f32 0.5, %v742_v17  ;;  %v834_v3 = vmul.f32 0.5, %v1195_v53 }
 0x18a   : > { %v790_v59 = vadd.f32 0.5, %v788_v35  ;;  %v840_v14 = vmul.f32 %v838_v25, %v698_v52 }
 0x18b   : > { %v836_v40 = vadd.f32 0.5, %v834_v3  ;;  %v844_v39 = vmul.f32 %v842_v50, %v744_v4 }
 0x18c   : > { %v850_v62 = vmul.f32 %v848_v1, %v790_v59 }
 0x18d   : > { %v846_v43 = vadd.f32 %v844_v39, %v840_v14  ;;  %v856_v37 = vmul.f32 %v854_v24, %v836_v40 }
 0x18f   : > { %v852_v29 = vadd.f32 %v850_v62, %v846_v43 }
 0x191   : > { %v858_v18 = vadd.f32 %v856_v37, %v852_v29 }
 0x193   : > { %v862_v41 = vadd.f32 %v860_v6, %v858_v18 }
 0x195   : > { %v864_v19 = vmul.f32 0.5, %v862_v41 }
 0x197   : > { %1196 = vtanh.f32 %v864_v19 }
 0x1a1   : > { %v1197_v45 = vpop.eup %1196 }
 0x1a2   : > { %v868_v46 = vmul.f32 0.5, %v1197_v45 }
 0x1a4   : > { %v870_v10 = vadd.f32 0.5, %v868_v46 }
 0x1a6   : > { %872 = vxpose.xlu1.b32.end [2/2] (short) %v870_v10, 128 }
 0x222   : > { %v887_v25 = vpop.trf.xlu1 }
 0x223   : > { %904 = vst.msk [vmem:[%s2197_s10] sm:$0xff] %vm903_vm0, %v887_v25 }
 0x226   : > { %v888_v50 = vpop.trf.xlu1 }
 0x227   : > { %905 = vst.msk [vmem:[%s2197_s10 + $0x8] sm:$0xff] %vm903_vm0, %v888_v50 }
 0x22a   : > { %v889_v1 = vpop.trf.xlu1 }
 0x22b   : > { %906 = vst.msk [vmem:[%s2197_s10 + $0x10] sm:$0xff] %vm903_vm0, %v889_v1 }
 0x22e   : > { %v890_v24 = vpop.trf.xlu1 }
 0x22f   : > { %907 = vst.msk [vmem:[%s2197_s10 + $0x18] sm:$0xff] %vm903_vm0, %v890_v24 }
 0x232   : > { %v891_v6 = vpop.trf.xlu1 }
 0x233   : > { %908 = vst.msk [vmem:[%s2197_s10 + $0x20] sm:$0xff] %vm903_vm0, %v891_v6 }
 0x236   : > { %v892_v22 = vpop.trf.xlu1 }
 0x237   : > { %909 = vst.msk [vmem:[%s2197_s10 + $0x28] sm:$0xff] %vm903_vm0, %v892_v22 }
 0x23a   : > { %v893_v31 = vpop.trf.xlu1 }
 0x23b   : > { %910 = vst.msk [vmem:[%s2197_s10 + $0x30] sm:$0xff] %vm903_vm0, %v893_v31 }
 0x23e   : > { %v894_v58 = vpop.trf.xlu1 }
 0x23f   : > { %911 = vst.msk [vmem:[%s2197_s10 + $0x38] sm:$0xff] %vm903_vm0, %v894_v58 }
 0x242   : > { %v895_v48 = vpop.trf.xlu1 }
 0x243   : > { %912 = vst.msk [vmem:[%s2197_s10 + $0x40] sm:$0xff] %vm903_vm0, %v895_v48 }
 0x246   : > { %v896_v49 = vpop.trf.xlu1 }
 0x247   : > { %913 = vst.msk [vmem:[%s2197_s10 + $0x48] sm:$0xff] %vm903_vm0, %v896_v49 }
 0x24a   : > { %v897_v2 = vpop.trf.xlu1 }
 0x24b   : > { %914 = vst.msk [vmem:[%s2197_s10 + $0x50] sm:$0xff] %vm903_vm0, %v897_v2 }
 0x24e   : > { %v898_v63 = vpop.trf.xlu1 }
 0x24f   : > { %915 = vst.msk [vmem:[%s2197_s10 + $0x58] sm:$0xff] %vm903_vm0, %v898_v63 }
 0x252   : > { %v899_v20 = vpop.trf.xlu1 }
 0x253   : > { %916 = vst.msk [vmem:[%s2197_s10 + $0x60] sm:$0xff] %vm903_vm0, %v899_v20 }
 0x256   : > { %v900_v36 = vpop.trf.xlu1 }
 0x257   : > { %917 = vst.msk [vmem:[%s2197_s10 + $0x68] sm:$0xff] %vm903_vm0, %v900_v36 }
 0x25a   : > { %v901_v23 = vpop.trf.xlu1 }
 0x25b   : > { %918 = vst.msk [vmem:[%s2197_s10 + $0x70] sm:$0xff] %vm903_vm0, %v901_v23 }
 0x25e   : > { %v902_v27 = vpop.trf.xlu1 }
 0x25f   : > { %919 = vst.msk [vmem:[%s2197_s10 + $0x78] sm:$0xff] %vm903_vm0, %v902_v27 }
 0x260 PF: > { %s2708_s12 = sld [smem:[#allocation12_spill]]  ;;  %s2709_s9 = sld [smem:[#allocation9_spill]] }
 0x261   : > { %s2710_s10 = sld [smem:[#allocation10_spill]]  ;;  %s2711_s11 = sld [smem:[#allocation13_spill]] }
 0x266   : > { %p13_p9 = scmp.ge.s32.totalorder %s2708_s12, 4  }
 0x268   :  { %15 = sbr.rel (!%p13_p9) target bundleno = 8 (0x8), region = 88 }
 0x26f   :  { %942 = vsyncpa [#allocation4], 1 }
 0x270   :  { %944 = vsyncpa [#allocation4 + $0x1], 1 }
 0x271   :  { %945 = vsyncpa [#allocation5], 1 }
 0x272   :  { %947 = vsyncpa [#allocation5 + $0x1], 1 }

</bundles_post_ra>
